<compile_context>
chip_gen: v5e
topology: v5e:2x2
jax: 0.10.0
libtpu: 0.0.40
codegen_flags: <defaults>
</compile_context>

<pallas_src>
import jax
import jax.numpy as jnp
from jax.experimental import pallas as pl
from jax.experimental.pallas import tpu as pltpu

_EPS = 1e-5          # torch.nn.LayerNorm default eps
_NEG_SLOPE = 0.01    # F.leaky_relu default negative_slope


def _leaky_relu(x):
    return jnp.where(x >= 0, x, _NEG_SLOPE * x)


def _layer_norm_cols(h, gamma, beta):
    """LayerNorm over the feature (sublane) axis of a (features, chunk) slab.

    One-pass moments: both cross-sublane reductions are issued together so the
    XLU can pipeline them.  var = E[h^2] - E[h]^2 is clamped at 0 to guard the
    tiny negatives catastrophic cancellation can produce (eps covers the rest).
    """
    inv_n = 1.0 / h.shape[0]
    s1 = jnp.sum(h, axis=0, keepdims=True)               # (1, chunk)
    s2 = jnp.sum(h * h, axis=0, keepdims=True)           # (1, chunk)
    mu = s1 * inv_n
    var = jnp.maximum(s2 * inv_n - mu * mu, 0.0)         # biased var, like torch
    return (h - mu) * jax.lax.rsqrt(var + _EPS) * gamma + beta


def _make_kernel(input_dim, hidden, chunk, num_chunks, fc2_on_mxu):
    def kernel(xt_ref, w1_ref, b1_ref, g1_ref, be1_ref,
               w2_ref, b2_ref, g2_ref, be2_ref, w3_ref, b3_ref,
               o_ref):
        # Hoist resident-parameter loads out of the chunk loop.
        w2 = w2_ref[...]                                  # (hidden, hidden)
        b1, g1, be1 = b1_ref[...], g1_ref[...], be1_ref[...]   # (hidden, chunk)
        b2, g2, be2 = b2_ref[...], g2_ref[...], be2_ref[...]   # (hidden, chunk)
        w3, b3 = w3_ref[...], b3_ref[...]                 # (hidden, chunk), (1, chunk)

        def body(c, carry):
            start = pl.multiple_of(c * chunk, chunk)
            xt = xt_ref[:, pl.ds(start, chunk)]           # (input_dim, chunk)

            # fc1: K = input_dim (=2) is far too small for the MXU; use
            # input_dim VPU multiply-adds against pre-replicated weight rows.
            h = w1_ref[0] * xt[0:1, :]
            for k in range(1, input_dim):                 # static unroll, tiny
                h = h + w1_ref[k] * xt[k:k + 1, :]
            h = h + b1                                    # (hidden, chunk)

            # bn1 -> leaky_relu -> dropout (identity in eval mode).
            h = _leaky_relu(_layer_norm_cols(h, g1, be1))

            # fc2: the only real matmul.  MXU by default; VPU outer-product
            # path is the per-generation A/B knob (v5e/v6e MRF drain).
            if fc2_on_mxu:
                h = jnp.dot(w2, h, preferred_element_type=jnp.float32) + b2
            else:
                acc = w2[:, 0:1] * h[0:1, :]
                for k in range(1, hidden):
                    acc = acc + w2[:, k:k + 1] * h[k:k + 1, :]
                h = acc + b2

            # bn2 -> leaky_relu -> dropout (identity in eval mode).
            h = _leaky_relu(_layer_norm_cols(h, g2, be2))

            # fc3: N = output_dim = 1 -> VPU multiply + sublane reduce; result
            # is lane-dense (1, chunk), stored with a full-width vst.
            y = jnp.sum(w3 * h, axis=0, keepdims=True) + b3
            o_ref[:, pl.ds(start, chunk)] = _leaky_relu(y).astype(o_ref.dtype)
            return carry

        jax.lax.fori_loop(0, num_chunks, body, 0, unroll=True)

    return kernel


def simplenet_forward(x, params, *, tb_max=1024, chunk=256, fc2_on_mxu=True):
    """x: (batch, input_dim) float32. params: torch-layout dict (see init_params)."""
    batch, input_dim = x.shape
    hidden = params["w1"].shape[0]
    out_dim = params["w3"].shape[0]
    assert out_dim == 1, "kernel specializes the N=1 logit head to the VPU path"
    assert chunk % 128 == 0, "lane chunk must be lane-aligned"
    assert tb_max % chunk == 0

    # Batch-tile selection (perf review): one grid step for small batches
    # (don't split a latency-bound tile across TCs), tb_max-row tiles otherwise.
    batch_c = chunk * pl.cdiv(batch, chunk)
    tb = batch_c if batch_c <= tb_max else tb_max
    num_tiles = pl.cdiv(batch, tb)
    batch_p = num_tiles * tb
    num_chunks = tb // chunk

    if batch_p != batch:                                  # pad odd batches
        x = jnp.pad(x, ((0, batch_p - batch), (0, 0)))

    # Lane-dense layout plumbing (wrapper-side transpose/reshape only).
    xt = x.astype(jnp.float32).T                          # (input_dim, batch_p)

    # Pre-replicate per-feature column params to full chunk width so in-kernel
    # adds/muls are vreg-aligned elementwise ops (no XLU lane-broadcasts).
    rep = lambda v: jnp.tile(jnp.asarray(v, jnp.float32).reshape(-1, 1), (1, chunk))
    w1 = jnp.asarray(params["w1"], jnp.float32)           # (hidden, input_dim)
    w1rep = jnp.stack([rep(w1[:, k]) for k in range(input_dim)])  # (input_dim, hidden, chunk)

    operands = (
        xt,
        w1rep,
        rep(params["b1"]), rep(params["g1"]), rep(params["be1"]),
        jnp.asarray(params["w2"], jnp.float32),           # (hidden, hidden)
        rep(params["b2"]), rep(params["g2"]), rep(params["be2"]),
        rep(params["w3"]),                                # (hidden, chunk)
        rep(params["b3"]),                                # (1, chunk)
    )

    def resident(arr):
        # Whole (small) parameter array as one block, same block every grid step.
        return pl.BlockSpec(arr.shape, lambda i: (0,) * arr.ndim)

    in_specs = [pl.BlockSpec((input_dim, tb), lambda i: (0, i))]
    in_specs += [resident(a) for a in operands[1:]]

    flops = 2 * batch_p * (input_dim * hidden + hidden * hidden + hidden)
    bytes_accessed = 4 * (batch_p * (input_dim + out_dim)
                          + sum(int(a.size) for a in operands[1:]))
    cost = pl.CostEstimate(flops=flops,
                           transcendentals=2 * batch_p,   # one rsqrt per LN per column
                           bytes_accessed=bytes_accessed)

    # VMEM scaling note: per grid step ~= double-buffered in/out tiles + resident
    # params + one (hidden, chunk) live slab -> ~0.3 MiB at these sizes on every
    # chip.  Re-derive (and set vmem_limit_bytes in CompilerParams) before
    # scaling hidden_dim or tb by ~10x; v7x (64 MiB physical, 32 MiB scoped
    # default) is the first generation to bind.
    kernel = _make_kernel(input_dim, hidden, chunk, num_chunks, fc2_on_mxu)
    yt = pl.pallas_call(
        kernel,
        out_shape=jax.ShapeDtypeStruct((1, batch_p), jnp.float32),
        grid=(num_tiles,),
        in_specs=in_specs,
        out_specs=pl.BlockSpec((1, tb), lambda i: (0, i)),
        compiler_params=pltpu.CompilerParams(
            dimension_semantics=("parallel",)),           # shard tiles across TCs (v7x)
        cost_estimate=cost,
    )(*operands)                                          # (1, batch_p), lane-dense

    return yt[:, :batch].T                                # back to (batch, 1)


def init_params(key, input_dim, hidden_dim, output_dim):
    """Synthetic parameters in torch layout: Linear weights are (out_features, in_features)."""
    ks = jax.random.split(key, 10)
    s1 = 1.0 / jnp.sqrt(input_dim)
    s2 = 1.0 / jnp.sqrt(hidden_dim)
    u = lambda k, shape, s: jax.random.uniform(k, shape, jnp.float32, -s, s)
    return {
        "w1": u(ks[0], (hidden_dim, input_dim), s1),
        "b1": u(ks[1], (hidden_dim,), s1),
        # LayerNorm affine, perturbed from (1, 0) so the affine path is exercised.
        "g1": 1.0 + 0.1 * jax.random.normal(ks[2], (hidden_dim,), jnp.float32),
        "be1": 0.1 * jax.random.normal(ks[3], (hidden_dim,), jnp.float32),
        "w2": u(ks[4], (hidden_dim, hidden_dim), s2),
        "b2": u(ks[5], (hidden_dim,), s2),
        "g2": 1.0 + 0.1 * jax.random.normal(ks[6], (hidden_dim,), jnp.float32),
        "be2": 0.1 * jax.random.normal(ks[7], (hidden_dim,), jnp.float32),
        "w3": u(ks[8], (output_dim, hidden_dim), s2),
        "b3": u(ks[9], (output_dim,), s2),
    }


def _layer_norm_rows(x, gamma, beta):
    mu = jnp.mean(x, axis=-1, keepdims=True)
    d = x - mu
    var = jnp.mean(d * d, axis=-1, keepdims=True)
    return d * jax.lax.rsqrt(var + _EPS) * gamma + beta


def reference_forward(x, p):
    """Pure-JAX reference matching the PyTorch forward (eval mode)."""
    hi = jax.lax.Precision.HIGHEST
    h = jnp.dot(x, p["w1"].T, precision=hi) + p["b1"]
    h = _leaky_relu(_layer_norm_rows(h, p["g1"], p["be1"]))
    h = jnp.dot(h, p["w2"].T, precision=hi) + p["b2"]
    h = _leaky_relu(_layer_norm_rows(h, p["g2"], p["be2"]))
    y = jnp.dot(h, p["w3"].T, precision=hi) + p["b3"]
    return _leaky_relu(y)


if __name__ == "__main__":
    # Moon classification: 2 input features, hidden 32, 1 output logit.
    input_dim, hidden_dim, output_dim = 2, 32, 1
    batch = 300   # NOT a multiple of the lane chunk; padded to one grid step

    key = jax.random.PRNGKey(0)
    k_x, k_p = jax.random.split(key)
    x = jax.random.normal(k_x, (batch, input_dim), jnp.float32)
    params = init_params(k_p, input_dim, hidden_dim, output_dim)

    out = jax.block_until_ready(simplenet_forward(x, params))
    ref = reference_forward(x, params)

    assert out.shape == (batch, output_dim), out.shape
    assert jnp.allclose(out, ref, atol=1e-4, rtol=1e-4), \
        float(jnp.max(jnp.abs(out - ref)))
    print("KERNEL_OK")
</pallas_src>

<mosaic_0001>
module attributes {stable_mosaic.version = 11 : i64} {
  func.func @kernel(%arg0: i32, %arg1: memref<2x512xf32, #tpu.memory_space<vmem>>, %arg2: memref<2x32x256xf32, #tpu.memory_space<vmem>>, %arg3: memref<32x256xf32, #tpu.memory_space<vmem>>, %arg4: memref<32x256xf32, #tpu.memory_space<vmem>>, %arg5: memref<32x256xf32, #tpu.memory_space<vmem>>, %arg6: memref<32x32xf32, #tpu.memory_space<vmem>>, %arg7: memref<32x256xf32, #tpu.memory_space<vmem>>, %arg8: memref<32x256xf32, #tpu.memory_space<vmem>>, %arg9: memref<32x256xf32, #tpu.memory_space<vmem>>, %arg10: memref<32x256xf32, #tpu.memory_space<vmem>>, %arg11: memref<1x256xf32, #tpu.memory_space<vmem>>, %arg12: memref<1x512xf32, #tpu.memory_space<vmem>>) attributes {dimension_semantics = [#tpu.dimension_semantics<parallel>], iteration_bounds = array<i64: 1>, scalar_prefetch = 0 : i64, scratch_operands = 0 : i64, tpu.core_type = #tpu.core_type<tc>, window_params = [{transform_indices = @transform_0, window_bounds = array<i64: 2, 512>}, {pipeline_mode = #tpu.pipeline_mode<synchronous>, transform_indices = @transform_1, window_bounds = array<i64: 2, 32, 256>}, {pipeline_mode = #tpu.pipeline_mode<synchronous>, transform_indices = @transform_2, window_bounds = array<i64: 32, 256>}, {pipeline_mode = #tpu.pipeline_mode<synchronous>, transform_indices = @transform_3, window_bounds = array<i64: 32, 256>}, {pipeline_mode = #tpu.pipeline_mode<synchronous>, transform_indices = @transform_4, window_bounds = array<i64: 32, 256>}, {pipeline_mode = #tpu.pipeline_mode<synchronous>, transform_indices = @transform_5, window_bounds = array<i64: 32, 32>}, {pipeline_mode = #tpu.pipeline_mode<synchronous>, transform_indices = @transform_6, window_bounds = array<i64: 32, 256>}, {pipeline_mode = #tpu.pipeline_mode<synchronous>, transform_indices = @transform_7, window_bounds = array<i64: 32, 256>}, {pipeline_mode = #tpu.pipeline_mode<synchronous>, transform_indices = @transform_8, window_bounds = array<i64: 32, 256>}, {pipeline_mode = #tpu.pipeline_mode<synchronous>, transform_indices = @transform_9, window_bounds = array<i64: 32, 256>}, {pipeline_mode = #tpu.pipeline_mode<synchronous>, transform_indices = @transform_10, window_bounds = array<i64: 1, 256>}, {transform_indices = @transform_11, window_bounds = array<i64: 1, 512>}]} {
    %c0 = arith.constant 0 : index
    %c0_0 = arith.constant 0 : index
    %0 = vector.load %arg6[%c0, %c0_0] : memref<32x32xf32, #tpu.memory_space<vmem>>, vector<32x32xf32>
    %c0_1 = arith.constant 0 : index
    %c0_2 = arith.constant 0 : index
    %1 = vector.load %arg3[%c0_1, %c0_2] : memref<32x256xf32, #tpu.memory_space<vmem>>, vector<32x256xf32>
    %c0_3 = arith.constant 0 : index
    %c0_4 = arith.constant 0 : index
    %2 = vector.load %arg4[%c0_3, %c0_4] : memref<32x256xf32, #tpu.memory_space<vmem>>, vector<32x256xf32>
    %c0_5 = arith.constant 0 : index
    %c0_6 = arith.constant 0 : index
    %3 = vector.load %arg5[%c0_5, %c0_6] : memref<32x256xf32, #tpu.memory_space<vmem>>, vector<32x256xf32>
    %c0_7 = arith.constant 0 : index
    %c0_8 = arith.constant 0 : index
    %4 = vector.load %arg7[%c0_7, %c0_8] : memref<32x256xf32, #tpu.memory_space<vmem>>, vector<32x256xf32>
    %c0_9 = arith.constant 0 : index
    %c0_10 = arith.constant 0 : index
    %5 = vector.load %arg8[%c0_9, %c0_10] : memref<32x256xf32, #tpu.memory_space<vmem>>, vector<32x256xf32>
    %c0_11 = arith.constant 0 : index
    %c0_12 = arith.constant 0 : index
    %6 = vector.load %arg9[%c0_11, %c0_12] : memref<32x256xf32, #tpu.memory_space<vmem>>, vector<32x256xf32>
    %c0_13 = arith.constant 0 : index
    %c0_14 = arith.constant 0 : index
    %7 = vector.load %arg10[%c0_13, %c0_14] : memref<32x256xf32, #tpu.memory_space<vmem>>, vector<32x256xf32>
    %c0_15 = arith.constant 0 : index
    %c0_16 = arith.constant 0 : index
    %8 = vector.load %arg11[%c0_15, %c0_16] : memref<1x256xf32, #tpu.memory_space<vmem>>, vector<1x256xf32>
    %c0_i32 = arith.constant 0 : i32
    %c256_i32 = arith.constant 256 : i32
    %9 = arith.muli %c0_i32, %c256_i32 : i32
    %10 = tpu.assume_multiple %9, 256 : i32
    %c0_17 = arith.constant 0 : index
    %11 = arith.index_cast %10 : i32 to index
    %12 = vector.load %arg1[%c0_17, %11] : memref<2x512xf32, #tpu.memory_space<vmem>>, vector<2x256xf32>
    %c0_18 = arith.constant 0 : index
    %c0_19 = arith.constant 0 : index
    %c0_20 = arith.constant 0 : index
    %13 = vector.load %arg2[%c0_18, %c0_19, %c0_20] : memref<2x32x256xf32, #tpu.memory_space<vmem>>, vector<1x32x256xf32>
    %14 = vector.shape_cast %13 : vector<1x32x256xf32> to vector<32x256xf32>
    %15 = vector.extract_strided_slice %12 {offsets = [0, 0], sizes = [1, 256], strides = [1, 1]} : vector<2x256xf32> to vector<1x256xf32>
    %16 = vector.broadcast %15 : vector<1x256xf32> to vector<32x256xf32>
    %17 = arith.mulf %14, %16 : vector<32x256xf32>
    %c1 = arith.constant 1 : index
    %c0_21 = arith.constant 0 : index
    %c0_22 = arith.constant 0 : index
    %18 = vector.load %arg2[%c1, %c0_21, %c0_22] : memref<2x32x256xf32, #tpu.memory_space<vmem>>, vector<1x32x256xf32>
    %19 = vector.shape_cast %18 : vector<1x32x256xf32> to vector<32x256xf32>
    %20 = vector.extract_strided_slice %12 {offsets = [1, 0], sizes = [1, 256], strides = [1, 1]} : vector<2x256xf32> to vector<1x256xf32>
    %21 = vector.broadcast %20 : vector<1x256xf32> to vector<32x256xf32>
    %22 = arith.mulf %19, %21 : vector<32x256xf32>
    %23 = arith.addf %17, %22 : vector<32x256xf32>
    %24 = arith.addf %23, %1 : vector<32x256xf32>
    %cst = arith.constant dense<0.000000e+00> : vector<256xf32>
    %25 = vector.multi_reduction <add>, %24, %cst [0] : vector<32x256xf32> to vector<256xf32>
    %26 = vector.shape_cast %25 : vector<256xf32> to vector<1x256xf32>
    %27 = arith.mulf %24, %24 : vector<32x256xf32>
    %cst_23 = arith.constant dense<0.000000e+00> : vector<256xf32>
    %28 = vector.multi_reduction <add>, %27, %cst_23 [0] : vector<32x256xf32> to vector<256xf32>
    %29 = vector.shape_cast %28 : vector<256xf32> to vector<1x256xf32>
    %cst_24 = arith.constant 3.125000e-02 : f32
    %30 = vector.broadcast %cst_24 : f32 to vector<1x256xf32>
    %31 = arith.mulf %26, %30 : vector<1x256xf32>
    %cst_25 = arith.constant 3.125000e-02 : f32
    %32 = vector.broadcast %cst_25 : f32 to vector<1x256xf32>
    %33 = arith.mulf %29, %32 : vector<1x256xf32>
    %34 = arith.mulf %31, %31 : vector<1x256xf32>
    %35 = arith.subf %33, %34 : vector<1x256xf32>
    %cst_26 = arith.constant 0.000000e+00 : f32
    %36 = vector.broadcast %cst_26 : f32 to vector<1x256xf32>
    %37 = arith.maximumf %35, %36 : vector<1x256xf32>
    %38 = vector.broadcast %31 : vector<1x256xf32> to vector<32x256xf32>
    %39 = arith.subf %24, %38 : vector<32x256xf32>
    %cst_27 = arith.constant 9.99999974E-6 : f32
    %40 = vector.broadcast %cst_27 : f32 to vector<1x256xf32>
    %41 = arith.addf %37, %40 : vector<1x256xf32>
    %42 = math.rsqrt %41 : vector<1x256xf32>
    %43 = vector.broadcast %42 : vector<1x256xf32> to vector<32x256xf32>
    %44 = arith.mulf %39, %43 : vector<32x256xf32>
    %45 = arith.mulf %44, %2 : vector<32x256xf32>
    %46 = arith.addf %45, %3 : vector<32x256xf32>
    %cst_28 = arith.constant 0.000000e+00 : f32
    %47 = vector.broadcast %cst_28 : f32 to vector<32x256xf32>
    %48 = arith.cmpf oge, %46, %47 : vector<32x256xf32>
    %cst_29 = arith.constant 0.00999999977 : f32
    %49 = vector.broadcast %cst_29 : f32 to vector<32x256xf32>
    %50 = arith.mulf %49, %46 : vector<32x256xf32>
    %51 = arith.select %48, %46, %50 : vector<32x256xi1>, vector<32x256xf32>
    %cst_30 = arith.constant dense<0.000000e+00> : vector<32x256xf32>
    %52 = tpu.matmul %0, %51, %cst_30 {dimension_numbers = #tpu.dot_dimension_numbers<[1], [0], [0], [1], [0, 0, 1, 1], [], []>} : vector<32x32xf32>, vector<32x256xf32>, vector<32x256xf32> -> vector<32x256xf32>
    %53 = arith.addf %52, %4 : vector<32x256xf32>
    %cst_31 = arith.constant dense<0.000000e+00> : vector<256xf32>
    %54 = vector.multi_reduction <add>, %53, %cst_31 [0] : vector<32x256xf32> to vector<256xf32>
    %55 = vector.shape_cast %54 : vector<256xf32> to vector<1x256xf32>
    %56 = arith.mulf %53, %53 : vector<32x256xf32>
    %cst_32 = arith.constant dense<0.000000e+00> : vector<256xf32>
    %57 = vector.multi_reduction <add>, %56, %cst_32 [0] : vector<32x256xf32> to vector<256xf32>
    %58 = vector.shape_cast %57 : vector<256xf32> to vector<1x256xf32>
    %cst_33 = arith.constant 3.125000e-02 : f32
    %59 = vector.broadcast %cst_33 : f32 to vector<1x256xf32>
    %60 = arith.mulf %55, %59 : vector<1x256xf32>
    %cst_34 = arith.constant 3.125000e-02 : f32
    %61 = vector.broadcast %cst_34 : f32 to vector<1x256xf32>
    %62 = arith.mulf %58, %61 : vector<1x256xf32>
    %63 = arith.mulf %60, %60 : vector<1x256xf32>
    %64 = arith.subf %62, %63 : vector<1x256xf32>
    %cst_35 = arith.constant 0.000000e+00 : f32
    %65 = vector.broadcast %cst_35 : f32 to vector<1x256xf32>
    %66 = arith.maximumf %64, %65 : vector<1x256xf32>
    %67 = vector.broadcast %60 : vector<1x256xf32> to vector<32x256xf32>
    %68 = arith.subf %53, %67 : vector<32x256xf32>
    %cst_36 = arith.constant 9.99999974E-6 : f32
    %69 = vector.broadcast %cst_36 : f32 to vector<1x256xf32>
    %70 = arith.addf %66, %69 : vector<1x256xf32>
    %71 = math.rsqrt %70 : vector<1x256xf32>
    %72 = vector.broadcast %71 : vector<1x256xf32> to vector<32x256xf32>
    %73 = arith.mulf %68, %72 : vector<32x256xf32>
    %74 = arith.mulf %73, %5 : vector<32x256xf32>
    %75 = arith.addf %74, %6 : vector<32x256xf32>
    %cst_37 = arith.constant 0.000000e+00 : f32
    %76 = vector.broadcast %cst_37 : f32 to vector<32x256xf32>
    %77 = arith.cmpf oge, %75, %76 : vector<32x256xf32>
    %cst_38 = arith.constant 0.00999999977 : f32
    %78 = vector.broadcast %cst_38 : f32 to vector<32x256xf32>
    %79 = arith.mulf %78, %75 : vector<32x256xf32>
    %80 = arith.select %77, %75, %79 : vector<32x256xi1>, vector<32x256xf32>
    %81 = arith.mulf %7, %80 : vector<32x256xf32>
    %cst_39 = arith.constant dense<0.000000e+00> : vector<256xf32>
    %82 = vector.multi_reduction <add>, %81, %cst_39 [0] : vector<32x256xf32> to vector<256xf32>
    %83 = vector.shape_cast %82 : vector<256xf32> to vector<1x256xf32>
    %84 = arith.addf %83, %8 : vector<1x256xf32>
    %cst_40 = arith.constant 0.000000e+00 : f32
    %85 = vector.broadcast %cst_40 : f32 to vector<1x256xf32>
    %86 = arith.cmpf oge, %84, %85 : vector<1x256xf32>
    %cst_41 = arith.constant 0.00999999977 : f32
    %87 = vector.broadcast %cst_41 : f32 to vector<1x256xf32>
    %88 = arith.mulf %87, %84 : vector<1x256xf32>
    %89 = arith.select %86, %84, %88 : vector<1x256xi1>, vector<1x256xf32>
    %c0_42 = arith.constant 0 : index
    %90 = arith.index_cast %10 : i32 to index
    %91 = vector.load %arg12[%c0_42, %90] : memref<1x512xf32, #tpu.memory_space<vmem>>, vector<1x256xf32>
    tpu.vector_store %arg12[%c0_42, %90], %89 {strides = array<i32>} : memref<1x512xf32, #tpu.memory_space<vmem>>, vector<1x256xf32>,
    %c1_i32 = arith.constant 1 : i32
    %c256_i32_43 = arith.constant 256 : i32
    %92 = arith.muli %c1_i32, %c256_i32_43 : i32
    %93 = tpu.assume_multiple %92, 256 : i32
    %c0_44 = arith.constant 0 : index
    %94 = arith.index_cast %93 : i32 to index
    %95 = vector.load %arg1[%c0_44, %94] : memref<2x512xf32, #tpu.memory_space<vmem>>, vector<2x256xf32>
    %c0_45 = arith.constant 0 : index
    %c0_46 = arith.constant 0 : index
    %c0_47 = arith.constant 0 : index
    %96 = vector.load %arg2[%c0_45, %c0_46, %c0_47] : memref<2x32x256xf32, #tpu.memory_space<vmem>>, vector<1x32x256xf32>
    %97 = vector.shape_cast %96 : vector<1x32x256xf32> to vector<32x256xf32>
    %98 = vector.extract_strided_slice %95 {offsets = [0, 0], sizes = [1, 256], strides = [1, 1]} : vector<2x256xf32> to vector<1x256xf32>
    %99 = vector.broadcast %98 : vector<1x256xf32> to vector<32x256xf32>
    %100 = arith.mulf %97, %99 : vector<32x256xf32>
    %c1_48 = arith.constant 1 : index
    %c0_49 = arith.constant 0 : index
    %c0_50 = arith.constant 0 : index
    %101 = vector.load %arg2[%c1_48, %c0_49, %c0_50] : memref<2x32x256xf32, #tpu.memory_space<vmem>>, vector<1x32x256xf32>
    %102 = vector.shape_cast %101 : vector<1x32x256xf32> to vector<32x256xf32>
    %103 = vector.extract_strided_slice %95 {offsets = [1, 0], sizes = [1, 256], strides = [1, 1]} : vector<2x256xf32> to vector<1x256xf32>
    %104 = vector.broadcast %103 : vector<1x256xf32> to vector<32x256xf32>
    %105 = arith.mulf %102, %104 : vector<32x256xf32>
    %106 = arith.addf %100, %105 : vector<32x256xf32>
    %107 = arith.addf %106, %1 : vector<32x256xf32>
    %cst_51 = arith.constant dense<0.000000e+00> : vector<256xf32>
    %108 = vector.multi_reduction <add>, %107, %cst_51 [0] : vector<32x256xf32> to vector<256xf32>
    %109 = vector.shape_cast %108 : vector<256xf32> to vector<1x256xf32>
    %110 = arith.mulf %107, %107 : vector<32x256xf32>
    %cst_52 = arith.constant dense<0.000000e+00> : vector<256xf32>
    %111 = vector.multi_reduction <add>, %110, %cst_52 [0] : vector<32x256xf32> to vector<256xf32>
    %112 = vector.shape_cast %111 : vector<256xf32> to vector<1x256xf32>
    %cst_53 = arith.constant 3.125000e-02 : f32
    %113 = vector.broadcast %cst_53 : f32 to vector<1x256xf32>
    %114 = arith.mulf %109, %113 : vector<1x256xf32>
    %cst_54 = arith.constant 3.125000e-02 : f32
    %115 = vector.broadcast %cst_54 : f32 to vector<1x256xf32>
    %116 = arith.mulf %112, %115 : vector<1x256xf32>
    %117 = arith.mulf %114, %114 : vector<1x256xf32>
    %118 = arith.subf %116, %117 : vector<1x256xf32>
    %cst_55 = arith.constant 0.000000e+00 : f32
    %119 = vector.broadcast %cst_55 : f32 to vector<1x256xf32>
    %120 = arith.maximumf %118, %119 : vector<1x256xf32>
    %121 = vector.broadcast %114 : vector<1x256xf32> to vector<32x256xf32>
    %122 = arith.subf %107, %121 : vector<32x256xf32>
    %cst_56 = arith.constant 9.99999974E-6 : f32
    %123 = vector.broadcast %cst_56 : f32 to vector<1x256xf32>
    %124 = arith.addf %120, %123 : vector<1x256xf32>
    %125 = math.rsqrt %124 : vector<1x256xf32>
    %126 = vector.broadcast %125 : vector<1x256xf32> to vector<32x256xf32>
    %127 = arith.mulf %122, %126 : vector<32x256xf32>
    %128 = arith.mulf %127, %2 : vector<32x256xf32>
    %129 = arith.addf %128, %3 : vector<32x256xf32>
    %cst_57 = arith.constant 0.000000e+00 : f32
    %130 = vector.broadcast %cst_57 : f32 to vector<32x256xf32>
    %131 = arith.cmpf oge, %129, %130 : vector<32x256xf32>
    %cst_58 = arith.constant 0.00999999977 : f32
    %132 = vector.broadcast %cst_58 : f32 to vector<32x256xf32>
    %133 = arith.mulf %132, %129 : vector<32x256xf32>
    %134 = arith.select %131, %129, %133 : vector<32x256xi1>, vector<32x256xf32>
    %cst_59 = arith.constant dense<0.000000e+00> : vector<32x256xf32>
    %135 = tpu.matmul %0, %134, %cst_59 {dimension_numbers = #tpu.dot_dimension_numbers<[1], [0], [0], [1], [0, 0, 1, 1], [], []>} : vector<32x32xf32>, vector<32x256xf32>, vector<32x256xf32> -> vector<32x256xf32>
    %136 = arith.addf %135, %4 : vector<32x256xf32>
    %cst_60 = arith.constant dense<0.000000e+00> : vector<256xf32>
    %137 = vector.multi_reduction <add>, %136, %cst_60 [0] : vector<32x256xf32> to vector<256xf32>
    %138 = vector.shape_cast %137 : vector<256xf32> to vector<1x256xf32>
    %139 = arith.mulf %136, %136 : vector<32x256xf32>
    %cst_61 = arith.constant dense<0.000000e+00> : vector<256xf32>
    %140 = vector.multi_reduction <add>, %139, %cst_61 [0] : vector<32x256xf32> to vector<256xf32>
    %141 = vector.shape_cast %140 : vector<256xf32> to vector<1x256xf32>
    %cst_62 = arith.constant 3.125000e-02 : f32
    %142 = vector.broadcast %cst_62 : f32 to vector<1x256xf32>
    %143 = arith.mulf %138, %142 : vector<1x256xf32>
    %cst_63 = arith.constant 3.125000e-02 : f32
    %144 = vector.broadcast %cst_63 : f32 to vector<1x256xf32>
    %145 = arith.mulf %141, %144 : vector<1x256xf32>
    %146 = arith.mulf %143, %143 : vector<1x256xf32>
    %147 = arith.subf %145, %146 : vector<1x256xf32>
    %cst_64 = arith.constant 0.000000e+00 : f32
    %148 = vector.broadcast %cst_64 : f32 to vector<1x256xf32>
    %149 = arith.maximumf %147, %148 : vector<1x256xf32>
    %150 = vector.broadcast %143 : vector<1x256xf32> to vector<32x256xf32>
    %151 = arith.subf %136, %150 : vector<32x256xf32>
    %cst_65 = arith.constant 9.99999974E-6 : f32
    %152 = vector.broadcast %cst_65 : f32 to vector<1x256xf32>
    %153 = arith.addf %149, %152 : vector<1x256xf32>
    %154 = math.rsqrt %153 : vector<1x256xf32>
    %155 = vector.broadcast %154 : vector<1x256xf32> to vector<32x256xf32>
    %156 = arith.mulf %151, %155 : vector<32x256xf32>
    %157 = arith.mulf %156, %5 : vector<32x256xf32>
    %158 = arith.addf %157, %6 : vector<32x256xf32>
    %cst_66 = arith.constant 0.000000e+00 : f32
    %159 = vector.broadcast %cst_66 : f32 to vector<32x256xf32>
    %160 = arith.cmpf oge, %158, %159 : vector<32x256xf32>
    %cst_67 = arith.constant 0.00999999977 : f32
    %161 = vector.broadcast %cst_67 : f32 to vector<32x256xf32>
    %162 = arith.mulf %161, %158 : vector<32x256xf32>
    %163 = arith.select %160, %158, %162 : vector<32x256xi1>, vector<32x256xf32>
    %164 = arith.mulf %7, %163 : vector<32x256xf32>
    %cst_68 = arith.constant dense<0.000000e+00> : vector<256xf32>
    %165 = vector.multi_reduction <add>, %164, %cst_68 [0] : vector<32x256xf32> to vector<256xf32>
    %166 = vector.shape_cast %165 : vector<256xf32> to vector<1x256xf32>
    %167 = arith.addf %166, %8 : vector<1x256xf32>
    %cst_69 = arith.constant 0.000000e+00 : f32
    %168 = vector.broadcast %cst_69 : f32 to vector<1x256xf32>
    %169 = arith.cmpf oge, %167, %168 : vector<1x256xf32>
    %cst_70 = arith.constant 0.00999999977 : f32
    %170 = vector.broadcast %cst_70 : f32 to vector<1x256xf32>
    %171 = arith.mulf %170, %167 : vector<1x256xf32>
    %172 = arith.select %169, %167, %171 : vector<1x256xi1>, vector<1x256xf32>
    %c0_71 = arith.constant 0 : index
    %173 = arith.index_cast %93 : i32 to index
    %174 = vector.load %arg12[%c0_71, %173] : memref<1x512xf32, #tpu.memory_space<vmem>>, vector<1x256xf32>
    tpu.vector_store %arg12[%c0_71, %173], %172 {strides = array<i32>} : memref<1x512xf32, #tpu.memory_space<vmem>>, vector<1x256xf32>,
    %c2_i32 = arith.constant 2 : i32
    return
  }
  func.func @transform_0(%arg0: i32) -> (i32, i32) {
    %c0_i32 = arith.constant 0 : i32
    %c0_i32_0 = arith.constant 0 : i32
    return %c0_i32, %arg0 : i32, i32
  }
  func.func @transform_1(%arg0: i32) -> (i32, i32, i32) {
    %c0_i32 = arith.constant 0 : i32
    %c0_i32_0 = arith.constant 0 : i32
    %c0_i32_1 = arith.constant 0 : i32
    %c0_i32_2 = arith.constant 0 : i32
    return %c0_i32, %c0_i32_0, %c0_i32_1 : i32, i32, i32
  }
  func.func @transform_2(%arg0: i32) -> (i32, i32) {
    %c0_i32 = arith.constant 0 : i32
    %c0_i32_0 = arith.constant 0 : i32
    %c0_i32_1 = arith.constant 0 : i32
    return %c0_i32, %c0_i32_0 : i32, i32
  }
  func.func @transform_3(%arg0: i32) -> (i32, i32) {
    %c0_i32 = arith.constant 0 : i32
    %c0_i32_0 = arith.constant 0 : i32
    %c0_i32_1 = arith.constant 0 : i32
    return %c0_i32, %c0_i32_0 : i32, i32
  }
  func.func @transform_4(%arg0: i32) -> (i32, i32) {
    %c0_i32 = arith.constant 0 : i32
    %c0_i32_0 = arith.constant 0 : i32
    %c0_i32_1 = arith.constant 0 : i32
    return %c0_i32, %c0_i32_0 : i32, i32
  }
  func.func @transform_5(%arg0: i32) -> (i32, i32) {
    %c0_i32 = arith.constant 0 : i32
    %c0_i32_0 = arith.constant 0 : i32
    %c0_i32_1 = arith.constant 0 : i32
    return %c0_i32, %c0_i32_0 : i32, i32
  }
  func.func @transform_6(%arg0: i32) -> (i32, i32) {
    %c0_i32 = arith.constant 0 : i32
    %c0_i32_0 = arith.constant 0 : i32
    %c0_i32_1 = arith.constant 0 : i32
    return %c0_i32, %c0_i32_0 : i32, i32
  }
  func.func @transform_7(%arg0: i32) -> (i32, i32) {
    %c0_i32 = arith.constant 0 : i32
    %c0_i32_0 = arith.constant 0 : i32
    %c0_i32_1 = arith.constant 0 : i32
    return %c0_i32, %c0_i32_0 : i32, i32
  }
  func.func @transform_8(%arg0: i32) -> (i32, i32) {
    %c0_i32 = arith.constant 0 : i32
    %c0_i32_0 = arith.constant 0 : i32
    %c0_i32_1 = arith.constant 0 : i32
    return %c0_i32, %c0_i32_0 : i32, i32
  }
  func.func @transform_9(%arg0: i32) -> (i32, i32) {
    %c0_i32 = arith.constant 0 : i32
    %c0_i32_0 = arith.constant 0 : i32
    %c0_i32_1 = arith.constant 0 : i32
    return %c0_i32, %c0_i32_0 : i32, i32
  }
  func.func @transform_10(%arg0: i32) -> (i32, i32) {
    %c0_i32 = arith.constant 0 : i32
    %c0_i32_0 = arith.constant 0 : i32
    %c0_i32_1 = arith.constant 0 : i32
    return %c0_i32, %c0_i32_0 : i32, i32
  }
  func.func @transform_11(%arg0: i32) -> (i32, i32) {
    %c0_i32 = arith.constant 0 : i32
    %c0_i32_0 = arith.constant 0 : i32
    return %c0_i32, %arg0 : i32, i32
  }
}

</mosaic_0001>

<bundles_post_ra>
// kernel: tpu_custom_call.1
= control target key start
LH: loop header
LB: loop body
LE: loop exit
PB: predicated region body
PF: predicated region fallthrough
CT: control target
= control target key end

     0   :  { %16 = vsyncpa [#allocation3], 0  ;;  %s2228_s0 = inlined_call_operand.hbm [shape: f32[2,512], index: 0, kind: input, shape index: {}]   ;;  %s2229_s1 = inlined_call_operand.hbm [shape: f32[2,32,256], index: 1, kind: input, shape index: {}]   ;;  %s2230_s2 = inlined_call_operand.hbm [shape: f32[32,256], index: 2, kind: input, shape index: {}]   ;;  %s2231_s3 = inlined_call_operand.hbm [shape: f32[32,256], index: 3, kind: input, shape index: {}]   ;;  %s2232_s4 = inlined_call_operand.hbm [shape: f32[32,256], index: 4, kind: input, shape index: {}]   ;;  %s2233_s5 = inlined_call_operand.hbm [shape: f32[32,32], index: 5, kind: input, shape index: {}]   ;;  %s2234_s6 = inlined_call_operand.hbm [shape: f32[32,256], index: 6, kind: input, shape index: {}]   ;;  %s2235_s7 = inlined_call_operand.hbm [shape: f32[32,256], index: 7, kind: input, shape index: {}]   ;;  %s2236_s8 = inlined_call_operand.hbm [shape: f32[32,256], index: 8, kind: input, shape index: {}]   ;;  %s2237_s9 = inlined_call_operand.hbm [shape: f32[32,256], index: 9, kind: input, shape index: {}]   ;;  %s2238_s10 = inlined_call_operand.vmem [shape: f32[1,256], index: 10, kind: input, shape index: {}]   ;;  %s2239_s11 = inlined_call_operand.hbm [shape: f32[1,512], index: 11, kind: output, shape index: {}]  }
   0x1   :  { %17 = vsyncpa [#allocation6], 0 }
   0x2   :  { %18 = vsyncpa [#allocation9], 0 }
   0x3   :  { %19 = vsyncpa [#allocation12], 0 }
   0x4   :  { %20 = vsyncpa [#allocation15], 0 }
   0x5   :  { %21 = vsyncpa [#allocation18], 0  ;;  %s38_s19 = sshll.u32 %s2229_s1, 4  ;;  %s39_s19 = int_to_ptr.hbm [resolvable:$true] %s38_s19 }
   0x6   :  { %22 = vsyncpa [#allocation4], 0  ;;  %s1475_s20 = smov [#allocation5]   ;;  %s64_s24 = sshll.u32 %s2231_s3, 4  ;;  %s65_s24 = int_to_ptr.hbm [resolvable:$true] %s64_s24 }
   0x7   :  { %s40_s21 = sshll.u32 %s1475_s20, 4  ;;  %s1476_s25 = smov 256   ;;  %s41_s21 = int_to_ptr.vmem [resolvable:$true] %s40_s21 }
   0x8   :  { %s1477_s26 = smov 16   ;;  %s1478_s27 = smov [#allocation8]  }
   0x9   :  { %46 = dma.hbm_to_vmem [thread:$0]  %s39_s19, 2048, %s41_s21, [#allocation6], %s1476_s25, %s1476_s25, %s1477_s26  }
   0xa   :  { %s66_s28 = sshll.u32 %s1478_s27, 4  ;;  %s90_s30 = sshll.u32 %s2233_s5, 4  ;;  %s67_s28 = int_to_ptr.vmem [resolvable:$true] %s66_s28  ;;  %s91_s30 = int_to_ptr.hbm [resolvable:$true] %s90_s30 }
   0xb   :  { %72 = dma.hbm_to_vmem [thread:$0]  %s65_s24, 1024, %s67_s28, [#allocation9], %s1476_s25, %s1476_s25, %s1477_s26  }
   0xc   :  { %s1479_s3 = smov [#allocation11]   ;;  %s116_s15 = sshll.u32 %s2235_s7, 4  ;;  %s117_s15 = int_to_ptr.hbm [resolvable:$true] %s116_s15 }
   0xd   :  { %s92_s12 = sshll.u32 %s1479_s3, 4  ;;  %s1480_s16 = smov 128   ;;  %s93_s12 = int_to_ptr.vmem [resolvable:$true] %s92_s12 }
   0xe   :  { %s1481_s17 = smov 8   ;;  %s1482_s18 = smov [#allocation14]  }
   0xf   :  { %98 = dma.hbm_to_vmem [thread:$0]  %s91_s30, 512, %s93_s12, [#allocation12], %s1480_s16, %s1480_s16, %s1481_s17  }
  0x10   :  { %s118_s19 = sshll.u32 %s1482_s18, 4  ;;  %s28_s21 = sshll.u32 %s2228_s0, 4  ;;  %s119_s19 = int_to_ptr.vmem [resolvable:$true] %s118_s19  ;;  %s29_s21 = int_to_ptr.hbm [resolvable:$true] %s28_s21 }
  0x11   :  { %124 = dma.hbm_to_vmem [thread:$0]  %s117_s15, 1024, %s119_s19, [#allocation15], %s1476_s25, %s1476_s25, %s1477_s26  }
  0x12   :  { %s51_s7 = sshll.u32 %s2230_s2, 4  ;;  %s1483_s24 = smov [#allocation2]   ;;  %s52_s7 = int_to_ptr.hbm [resolvable:$true] %s51_s7 }
  0x13   :  { %s30_s27 = sshll.u32 %s1483_s24, 4  ;;  %s1484_s28 = smov [#allocation7]   ;;  %s31_s27 = int_to_ptr.vmem [resolvable:$true] %s30_s27 }
  0x14   :  { %33 = dma.hbm_to_vmem [thread:$0]  %s29_s21, 128, %s31_s27, [#allocation3]  }
  0x15   :  { %s53_s29 = sshll.u32 %s1484_s28, 4  ;;  %s77_s0 = sshll.u32 %s2232_s4, 4  ;;  %s54_s29 = int_to_ptr.vmem [resolvable:$true] %s53_s29  ;;  %s78_s0 = int_to_ptr.hbm [resolvable:$true] %s77_s0 }
  0x16   :  { %59 = dma.hbm_to_vmem [thread:$0]  %s52_s7, 1024, %s54_s29, [#allocation6], %s1476_s25, %s1476_s25, %s1477_s26  }
  0x17   :  { %s103_s2 = sshll.u32 %s2234_s6, 4  ;;  %s1485_s13 = smov [#allocation10]   ;;  %s104_s2 = int_to_ptr.hbm [resolvable:$true] %s103_s2 }
  0x18   :  { %s79_s14 = sshll.u32 %s1485_s13, 4  ;;  %s1486_s15 = smov [#allocation13]   ;;  %s80_s14 = int_to_ptr.vmem [resolvable:$true] %s79_s14 }
  0x19   :  { %85 = dma.hbm_to_vmem [thread:$0]  %s78_s0, 1024, %s80_s14, [#allocation9], %s1476_s25, %s1476_s25, %s1477_s26  }
  0x1a   :  { %s105_s4 = sshll.u32 %s1486_s15, 4  ;;  %s129_s18 = sshll.u32 %s2236_s8, 4  ;;  %s106_s4 = int_to_ptr.vmem [resolvable:$true] %s105_s4  ;;  %s130_s18 = int_to_ptr.hbm [resolvable:$true] %s129_s18 }
  0x1b   :  { %111 = dma.hbm_to_vmem [thread:$0]  %s104_s2, 1024, %s106_s4, [#allocation12], %s1476_s25, %s1476_s25, %s1477_s26  }
  0x1c   :  { %s142_s5 = sshll.u32 %s2237_s9, 4  ;;  %s1487_s20 = smov [#allocation16]   ;;  %s143_s5 = int_to_ptr.hbm [resolvable:$true] %s142_s5 }
  0x1d   :  { %s131_s21 = sshll.u32 %s1487_s20, 4  ;;  %s1488_s22 = smov [#allocation17]   ;;  %s132_s21 = int_to_ptr.vmem [resolvable:$true] %s131_s21 }
  0x1e   :  { %137 = dma.hbm_to_vmem [thread:$0]  %s130_s18, 1024, %s132_s21, [#allocation15], %s1476_s25, %s1476_s25, %s1477_s26  }
  0x1f   :  { %s144_s8 = sshll.u32 %s1488_s22, 4  ;;  %s145_s8 = int_to_ptr.vmem [resolvable:$true] %s144_s8 }
  0x20   :  { %150 = dma.hbm_to_vmem [thread:$0]  %s143_s5, 1024, %s145_s8, [#allocation18], %s1476_s25, %s1476_s25, %s1477_s26  }
  0x21   :  { %1461 = dma.done.wait [#allocation3], 128  }
  0x22   :  { %1462 = vsyncadd [#allocation3], 4294967168 }
  0x23   :  { %1463 = dma.done.wait [#allocation6], 3072  }
  0x24   :  { %1464 = vsyncadd [#allocation6], 4294964224 }
  0x25   :  { %1465 = dma.done.wait [#allocation9], 2048  }
  0x26   :  { %1466 = vsyncadd [#allocation9], 4294965248 }
  0x27   :  { %1467 = dma.done.wait [#allocation12], 1536  }
  0x28   :  { %1468 = vsyncadd [#allocation12], 4294965760 }
  0x29   :  { %1469 = dma.done.wait [#allocation15], 2048  }
  0x2a   :  { %1470 = vsyncadd [#allocation15], 4294965248 }
  0x2b   :  { %1471 = dma.done.wait [#allocation18], 1024  }
  0x2c   :  { %1472 = vsyncadd [#allocation18], 4294966272  ;;  %v254_v0 = vld [vmem:[#allocation2] sm:$0xf]  ;;  %v1604_v1 = vld [vmem:[#allocation5] sm:$0xff]  ;;  %s1135_s24 = sshll.u32 %s2239_s11, 4  ;;  %s1136_s24 = int_to_ptr.hbm [resolvable:$true] %s1135_s24 }
  0x2d   :  { %v1606_v2 = vld [vmem:[#allocation5 + $0x10] sm:$0xff]  ;;  %v264_v3 = vperm.slane %v254_v0, 0  ;;  %v287_v4 = vperm.slane %v254_v0, 1  ;;  %v265_v5 = vperm.slane %v254_v0, 2  ;;  %v1608_v6 = vld [vmem:[#allocation5 + $0x20] sm:$0xff]  ;;  %v288_v9 = vperm.slane %v254_v0, 3 }
  0x2e   :  { %v1610_v7 = vld [vmem:[#allocation5 + $0x30] sm:$0xff]  ;;  %v1612_v8 = vld [vmem:[#allocation5 + $0x40] sm:$0xff]  ;;  %v1620_v16 = vld [vmem:[#allocation5 + $0x8] sm:$0xff] }
  0x2f   :  { %v268_v10 = vperm.slane %v264_v3, 0  ;;  %v1614_v11 = vld [vmem:[#allocation5 + $0x50] sm:$0xff]  ;;  %v1616_v12 = vld [vmem:[#allocation5 + $0x60] sm:$0xff]  ;;  %v291_v14 = vperm.slane %v287_v4, 1  ;;  %v269_v15 = vperm.slane %v265_v5, 0  ;;  %v1622_v17 = vld [vmem:[#allocation5 + $0x18] sm:$0xff] }
  0x30   :  { %v1618_v13 = vld [vmem:[#allocation5 + $0x70] sm:$0xff]  ;;  %v292_v18 = vperm.slane %v288_v9, 1  ;;  %v1624_v19 = vld [vmem:[#allocation7] sm:$0xff]  ;;  %v1630_v24 = vld [vmem:[#allocation5 + $0x28] sm:$0xff] }
  0x31   :  { %v270_v20 = vmul.f32 %v268_v10, %v1604_v1  ;;  %v272_v21 = vmul.f32 %v268_v10, %v1606_v2  ;;  %v274_v22 = vmul.f32 %v268_v10, %v1608_v6  ;;  %v276_v23 = vmul.f32 %v268_v10, %v1610_v7  ;;  %v1632_v25 = vld [vmem:[#allocation5 + $0x38] sm:$0xff]  ;;  %v1634_v26 = vld [vmem:[#allocation5 + $0x48] sm:$0xff]  ;;  %v1646_v34 = vld [vmem:[#allocation7 + $0x10] sm:$0xff] }
  0x32   :  { %v293_v27 = vmul.f32 %v291_v14, %v1612_v8  ;;  %v295_v28 = vmul.f32 %v291_v14, %v1614_v11  ;;  %v297_v29 = vmul.f32 %v291_v14, %v1616_v12  ;;  %v299_v30 = vmul.f32 %v291_v14, %v1618_v13  ;;  %v1640_v31 = vld [vmem:[#allocation5 + $0x58] sm:$0xff]  ;;  %v1642_v32 = vld [vmem:[#allocation5 + $0x68] sm:$0xff]  ;;  %v1648_v35 = vld [vmem:[#allocation7 + $0x20] sm:$0xff] }
  0x33   :  { %v1644_v33 = vld [vmem:[#allocation5 + $0x78] sm:$0xff]  ;;  %v1650_v36 = vld [vmem:[#allocation7 + $0x30] sm:$0xff]  ;;  %v271_v37 = vmul.f32 %v269_v15, %v1620_v16  ;;  %v273_v38 = vmul.f32 %v269_v15, %v1622_v17  ;;  %v275_v39 = vmul.f32 %v269_v15, %v1630_v24  ;;  %v277_v40 = vmul.f32 %v269_v15, %v1632_v25  ;;  %v1672_v53 = vld [vmem:[#allocation7 + $0x8] sm:$0xff] }
  0x34   :  { %v301_v41 = vadd.f32 %v293_v27, %v270_v20  ;;  %v303_v42 = vadd.f32 %v295_v28, %v272_v21  ;;  %v305_v43 = vadd.f32 %v297_v29, %v274_v22  ;;  %v307_v44 = vadd.f32 %v299_v30, %v276_v23  ;;  %v1674_v54 = vld [vmem:[#allocation7 + $0x18] sm:$0xff]  ;;  %v1676_v55 = vld [vmem:[#allocation7 + $0x28] sm:$0xff] }
  0x35   :  { %v294_v45 = vmul.f32 %v292_v18, %v1634_v26  ;;  %v296_v46 = vmul.f32 %v292_v18, %v1640_v31  ;;  %v298_v47 = vmul.f32 %v292_v18, %v1642_v32  ;;  %v300_v48 = vmul.f32 %v292_v18, %v1644_v33  ;;  %v1678_v56 = vld [vmem:[#allocation7 + $0x38] sm:$0xff] }
  0x36   :  { %v1661_v49 = vadd.f32 %v301_v41, %v1624_v19  ;;  %v1664_v50 = vadd.f32 %v303_v42, %v1646_v34  ;;  %v1667_v51 = vadd.f32 %v305_v43, %v1648_v35  ;;  %v1670_v52 = vadd.f32 %v307_v44, %v1650_v36  ;;  %v1680_v61 = vld [vmem:[#allocation2 + $0x4] sm:$0xf] }
  0x37   :  { %v302_v57 = vadd.f32 %v294_v45, %v271_v37  ;;  %v304_v58 = vadd.f32 %v296_v46, %v273_v38  ;;  %v306_v59 = vadd.f32 %v298_v47, %v275_v39  ;;  %v308_v60 = vadd.f32 %v300_v48, %v277_v40 }
  0x38   :  { %v317_v62 = vadd.f32 %v1664_v50, %v1661_v49  ;;  %v335_v63 = vmul.f32 %v1661_v49, %v1661_v49  ;;  %v337_v0 = vmul.f32 %v1664_v50, %v1664_v50  ;;  %v339_v3 = vmul.f32 %v1667_v51, %v1667_v51 }
  0x39   :  { %v341_v4 = vmul.f32 %v1670_v52, %v1670_v52  ;;  %v1693_v5 = vadd.f32 %v302_v57, %v1672_v53  ;;  %v1696_v9 = vadd.f32 %v304_v58, %v1674_v54  ;;  %v1699_v10 = vadd.f32 %v306_v59, %v1676_v55 }
  0x3a   :  { %v318_v14 = vadd.f32 %v317_v62, %v1667_v51  ;;  %v343_v15 = vadd.f32 %v337_v0, %v335_v63  ;;  %v1703_v18 = vadd.f32 %v308_v60, %v1678_v56  ;;  %v713_v20 = vperm.slane %v1680_v61, 0 }
  0x3b   :  { %v326_v21 = vadd.f32 %v1696_v9, %v1693_v5  ;;  %v336_v22 = vmul.f32 %v1693_v5, %v1693_v5  ;;  %v338_v23 = vmul.f32 %v1696_v9, %v1696_v9  ;;  %v340_v27 = vmul.f32 %v1699_v10, %v1699_v10 }
  0x3c   :  { %v319_v28 = vadd.f32 %v318_v14, %v1670_v52  ;;  %v344_v29 = vadd.f32 %v343_v15, %v339_v3  ;;  %v717_v30 = vperm.slane %v713_v20, 0  ;;  %v342_v38 = vmul.f32 %v1703_v18, %v1703_v18 }
  0x3d   :  { %v327_v37 = vadd.f32 %v326_v21, %v1699_v10  ;;  %v352_v39 = vadd.f32 %v338_v23, %v336_v22  ;;  %v735_v40 = vperm.slane %v1680_v61, 1  ;;  %v714_v46 = vperm.slane %v1680_v61, 2 }
  0x3e   :  { %v320_v41 = vrot.slane %v319_v28, 4  ;;  %v345_v42 = vadd.f32 %v344_v29, %v341_v4  ;;  %v719_v45 = vmul.f32 %v717_v30, %v1604_v1  ;;  %v721_v57 = vmul.f32 %v717_v30, %v1606_v2 }
  0x3f   :  { %v328_v43 = vadd.f32 %v327_v37, %v1703_v18  ;;  %v353_v44 = vadd.f32 %v352_v39, %v340_v27  ;;  %v739_v58 = vperm.slane %v735_v40, 1  ;;  %v723_v62 = vmul.f32 %v717_v30, %v1608_v6 }
  0x40   :  { %v321_v47 = vadd.f32 %v320_v41, %v319_v28  ;;  %v346_v48 = vrot.slane %v345_v42, 4  ;;  %v725_v63 = vmul.f32 %v717_v30, %v1610_v7 }
  0x41   :  { %v329_v59 = vrot.slane %v328_v43, 4  ;;  %v354_v60 = vadd.f32 %v353_v44, %v342_v38  ;;  %v741_v4 = vmul.f32 %v739_v58, %v1612_v8  ;;  %v743_v14 = vmul.f32 %v739_v58, %v1614_v11 }
  0x42   :  { %v322_v0 = vrot.slane %v321_v47, 2  ;;  %v347_v3 = vadd.f32 %v346_v48, %v345_v42  ;;  %v745_v20 = vmul.f32 %v739_v58, %v1616_v12  ;;  %v747_v21 = vmul.f32 %v739_v58, %v1618_v13 }
  0x43   :  { %v330_v1 = vadd.f32 %v329_v59, %v328_v43  ;;  %v355_v15 = vrot.slane %v354_v60, 4  ;;  %v749_v23 = vadd.f32 %v741_v4, %v719_v45  ;;  %v751_v27 = vadd.f32 %v743_v14, %v721_v57 }
  0x44   :  { %v323_v2 = vadd.f32 %v322_v0, %v321_v47  ;;  %v348_v22 = vrot.slane %v347_v3, 2  ;;  %v753_v29 = vadd.f32 %v745_v20, %v723_v62  ;;  %v755_v7 = vadd.f32 %v747_v21, %v725_v63 }
  0x45   :  { %v331_v28 = vrot.slane %v330_v1, 2  ;;  %v356_v6 = vadd.f32 %v355_v15, %v354_v60  ;;  %v1730_v8 = vadd.f32 %v749_v23, %v1624_v19  ;;  %v1733_v11 = vadd.f32 %v751_v27, %v1646_v34 }
  0x46   :  { %v324_v30 = vrot.slane %v323_v2, 1  ;;  %v349_v37 = vadd.f32 %v348_v22, %v347_v3  ;;  %v1736_v13 = vadd.f32 %v753_v29, %v1648_v35  ;;  %v1739_v39 = vadd.f32 %v755_v7, %v1650_v36 }
  0x47   :  { %v332_v38 = vadd.f32 %v331_v28, %v330_v1  ;;  %v357_v12 = vrot.slane %v356_v6, 2  ;;  %v765_v42 = vadd.f32 %v1733_v11, %v1730_v8  ;;  %v783_v19 = vmul.f32 %v1730_v8, %v1730_v8 }
  0x48   :  { %v325_v40 = vadd.f32 %v324_v30, %v323_v2  ;;  %v350_v41 = vrot.slane %v349_v37, 1  ;;  %v785_v34 = vmul.f32 %v1733_v11, %v1733_v11  ;;  %v787_v35 = vmul.f32 %v1736_v13, %v1736_v13 }
  0x49   :  { %v333_v43 = vrot.slane %v332_v38, 1  ;;  %v358_v44 = vadd.f32 %v357_v12, %v356_v6  ;;  %v766_v36 = vadd.f32 %v765_v42, %v1736_v13  ;;  %v718_v48 = vperm.slane %v714_v46, 0 }
  0x4a   :  { %v351_v45 = vadd.f32 %v350_v41, %v349_v37  ;;  %v1749_v47 = vmul.f32 0.03125, %v325_v40  ;;  %v789_v59 = vmul.f32 %v1739_v39, %v1739_v39  ;;  %v791_v60 = vadd.f32 %v785_v34, %v783_v19 }
  0x4b   :  { %v334_v57 = vadd.f32 %v333_v43, %v332_v38  ;;  %v359_v58 = vrot.slane %v358_v44, 1  ;;  %v767_v0 = vadd.f32 %v766_v36, %v1739_v39  ;;  %v736_v3 = vperm.slane %v1680_v61, 3 }
  0x4c   :  { %v363_v62 = vmul.f32 0.03125, %v351_v45  ;;  %v365_v63 = vmul.f32 %v1749_v47, %v1749_v47  ;;  %v792_v1 = vadd.f32 %v791_v60, %v787_v35  ;;  %v720_v22 = vmul.f32 %v718_v48, %v1620_v16 }
  0x4d   :  { %v360_v4 = vadd.f32 %v359_v58, %v358_v44  ;;  %v1758_v14 = vmul.f32 0.03125, %v334_v57  ;;  %v768_v46 = vrot.slane %v767_v0, 4  ;;  %v722_v28 = vmul.f32 %v718_v48, %v1622_v17 }
  0x4e   :  { %v367_v15 = vsub.f32 %v363_v62, %v365_v63  ;;  %v793_v2 = vadd.f32 %v792_v1, %v789_v59  ;;  %v740_v6 = vperm.slane %v736_v3, 1  ;;  %v724_v7 = vmul.f32 %v718_v48, %v1630_v24 }
  0x4f   :  { %v364_v20 = vmul.f32 0.03125, %v360_v4  ;;  %v366_v21 = vmul.f32 %v1758_v14, %v1758_v14  ;;  %v769_v27 = vadd.f32 %v768_v46, %v767_v0  ;;  %v726_v30 = vmul.f32 %v718_v48, %v1632_v25 }
  0x50   :  { %v369_v23 = vmax.f32 %v367_v15, 0.0  ;;  %v794_v61 = vrot.slane %v793_v2, 4  ;;  %v742_v12 = vmul.f32 %v740_v6, %v1634_v26  ;;  %v744_v40 = vmul.f32 %v740_v6, %v1640_v31 }
  0x51   :  { %v368_v29 = vsub.f32 %v364_v20, %v366_v21  ;;  %v770_v38 = vrot.slane %v769_v27, 2  ;;  %v746_v16 = vmul.f32 %v740_v6, %v1642_v32  ;;  %v748_v19 = vmul.f32 %v740_v6, %v1644_v33 }
  0x52   :  { %v379_v37 = vadd.f32 1e-05, %v369_v23  ;;  %v795_v42 = vadd.f32 %v794_v61, %v793_v2  ;;  %v750_v43 = vadd.f32 %v742_v12, %v720_v22  ;;  %v752_v24 = vadd.f32 %v744_v40, %v722_v28 }
  0x53   :  { %v370_v41 = vmax.f32 %v368_v29, 0.0  ;;  %v771_v17 = vadd.f32 %v770_v38, %v769_v27  ;;  %v754_v35 = vadd.f32 %v746_v16, %v724_v7  ;;  %v756_v45 = vadd.f32 %v748_v19, %v726_v30  ;;  %v1802_v19 = vld [vmem:[#allocation8 + $0x30] sm:$0xff] }
  0x54   :  { %1181 = vrsqrt.f32 %v379_v37  ;;  %v796_v34 = vrot.slane %v795_v42, 2  ;;  %v1771_v36 = vadd.f32 %v750_v43, %v1672_v53  ;;  %v1774_v31 = vadd.f32 %v752_v24, %v1674_v54 }
  0x55   :  { %v380_v44 = vadd.f32 1e-05, %v370_v41  ;;  %v772_v25 = vrot.slane %v771_v17, 1  ;;  %v1777_v33 = vadd.f32 %v754_v35, %v1676_v55  ;;  %v1780_v48 = vadd.f32 %v756_v45, %v1678_v56  ;;  %v1810_v35 = vld [vmem:[#allocation10 + $0x30] sm:$0xff] }
  0x56   :  { %v797_v26 = vadd.f32 %v796_v34, %v795_v42  ;;  %v784_v57 = vmul.f32 %v1771_v36, %v1771_v36  ;;  %v774_v53 = vadd.f32 %v1774_v31, %v1771_v36  ;;  %v786_v59 = vmul.f32 %v1774_v31, %v1774_v31 }
  0x57   :  { %1183 = vrsqrt.f32 %v380_v44  ;;  %v773_v32 = vadd.f32 %v772_v25, %v771_v17  ;;  %v788_v55 = vmul.f32 %v1777_v33, %v1777_v33  ;;  %v790_v3 = vmul.f32 %v1780_v48, %v1780_v48 }
  0x58   :  { %v798_v58 = vrot.slane %v797_v26, 1  ;;  %v775_v56 = vadd.f32 %v774_v53, %v1777_v33  ;;  %v800_v4 = vadd.f32 %v786_v59, %v784_v57  ;;  %vm387_vm0 = vweird.f32 %v379_v37 }
  0x59   :  { %v1788_v54 = vmul.f32 0.03125, %v773_v32  ;;  %v377_v29 = vsub.f32 %v1670_v52, %v1749_v47  ;;  %vm397_vm3 = vweird.f32 %v380_v44  ;;  %v378_v52 = vsub.f32 %v1703_v18, %v1758_v14 }
  0x5a   :  { %v1182_v60 = vpop.eup %1181  ;;  %v799_v63 = vadd.f32 %v798_v58, %v797_v26  ;;  %v776_v20 = vadd.f32 %v775_v56, %v1780_v48  ;;  %v801_v2 = vadd.f32 %v800_v4, %v788_v55  ;;  %v1813_v26 = vld [vmem:[#allocation8 + $0x38] sm:$0xff]  ;;  %v375_v53 = vsub.f32 %v1667_v51, %v1749_v47 }
  0x5b   :  { %v382_v62 = vmul.f32 %v1182_v60, %v379_v37  ;;  %v813_v0 = vmul.f32 %v1788_v54, %v1788_v54  ;;  %vm388_vm1 = vweird.f32 %v1182_v60  ;;  %v376_v59 = vsub.f32 %v1699_v10, %v1758_v14  ;;  %v1823_v55 = vld [vmem:[#allocation10 + $0x38] sm:$0xff] }
  0x5c   :  { %v811_v46 = vmul.f32 0.03125, %v799_v63  ;;  %v777_v27 = vrot.slane %v776_v20, 4  ;;  %v802_v6 = vadd.f32 %v801_v2, %v790_v3  ;;  %vm389_vm2 = vmor %vm387_vm0, %vm388_vm1  ;;  %v825_v51 = vsub.f32 %v1739_v39, %v1788_v54 }
  0x5d   :  { %v1184_v1 = vpop.eup %1183  ;;  %v383_v15 = vmul.f32 %v1182_v60, %v382_v62 }
  0x5e   :  { %v392_v21 = vmul.f32 %v1184_v1, %v380_v44  ;;  %v815_v23 = vsub.f32 %v811_v46, %v813_v0  ;;  %v778_v30 = vadd.f32 %v777_v27, %v776_v20  ;;  %vm398_vm4 = vweird.f32 %v1184_v1  ;;  %v1835_v46 = vld [vmem:[#allocation8 + $0x28] sm:$0xff]  ;;  %v1841_v27 = vld [vmem:[#allocation10 + $0x20] sm:$0xff] }
  0x5f   :  { %v384_v22 = vmul.f32 0.5, %v383_v15  ;;  %v803_v12 = vrot.slane %v802_v6, 4  ;;  %vm399_vm5 = vmor %vm397_vm3, %vm398_vm4  ;;  %v1833_v15 = vld [vmem:[#allocation8 + $0x20] sm:$0xff] }
  0x60   :  { %v393_v28 = vmul.f32 %v1184_v1, %v392_v21  ;;  %v817_v7 = vmax.f32 %v815_v23, 0.0  ;;  %v779_v41 = vrot.slane %v778_v30, 2 }
  0x61   :  { %v385_v61 = vsub.f32 1.5, %v384_v22  ;;  %v804_v16 = vadd.f32 %v803_v12, %v802_v6  ;;  %v373_v12 = vsub.f32 %v1664_v50, %v1749_v47 }
  0x62   :  { %v394_v38 = vmul.f32 0.5, %v393_v28  ;;  %v1800_v40 = vadd.f32 1e-05, %v817_v7  ;;  %v780_v43 = vadd.f32 %v779_v41, %v778_v30  ;;  %v1844_v28 = vld [vmem:[#allocation10 + $0x28] sm:$0xff] }
  0x63   :  { %v386_v37 = vmul.f32 %v1182_v60, %v385_v61  ;;  %v805_v24 = vrot.slane %v804_v16, 2 }
  0x64   :  { %v395_v42 = vsub.f32 1.5, %v394_v38  ;;  %1185 = vrsqrt.f32 %v1800_v40  ;;  %v781_v25 = vrot.slane %v780_v43, 1  ;;  %vm835_vm7 = vweird.f32 %v1800_v40 }
  0x65   :  { %v1804_v17 = vsel %vm389_vm2, %v1182_v60, %v386_v37  ;;  %v806_v57 = vadd.f32 %v805_v24, %v804_v16  ;;  %v207_v16 = vld [vmem:[#allocation8 + $0x10] sm:$0xff] }
  0x66   :  { %v407_v44 = vmul.f32 %v1804_v17, %v377_v29  ;;  %v396_v34 = vmul.f32 %v1184_v1, %v395_v42  ;;  %v782_v58 = vadd.f32 %v781_v25, %v780_v43  ;;  %v405_v3 = vmul.f32 %v1804_v17, %v375_v53 }
  0x67   :  { %v807_v62 = vrot.slane %v806_v57, 1  ;;  %v823_v42 = vsub.f32 %v1736_v13, %v1788_v54  ;;  %v403_v25 = vmul.f32 %v1804_v17, %v373_v12 }
  0x68   :  { %v415_v45 = vmul.f32 %v407_v44, %v1802_v19  ;;  %v1815_v32 = vsel %vm399_vm5, %v1184_v1, %v396_v34  ;;  %v1826_v0 = vmul.f32 0.03125, %v782_v58  ;;  %v413_v39 = vmul.f32 %v405_v3, %v1833_v15  ;;  %v1855_v34 = vld [vmem:[#allocation8 + $0x18] sm:$0xff]  ;;  %v205_v3 = vld [vmem:[#allocation8] sm:$0xff] }
  0x69   :  { %v408_v18 = vmul.f32 %v1815_v32, %v378_v52  ;;  %v406_v4 = vmul.f32 %v1815_v32, %v376_v59  ;;  %v808_v21 = vadd.f32 %v807_v62, %v806_v57  ;;  %v374_v52 = vsub.f32 %v1696_v9, %v1758_v14  ;;  %v215_v59 = vld [vmem:[#allocation10 + $0x10] sm:$0xff]  ;;  %v1872_v62 = vld [vmem:[#allocation10 + $0x18] sm:$0xff] }
  0x6a   :  { %v423_v60 = vadd.f32 %v415_v45, %v1810_v35  ;;  %v1186_v63 = vpop.eup %1185  ;;  %v814_v2 = vmul.f32 %v1826_v0, %v1826_v0  ;;  %v421_v30 = vadd.f32 %v413_v39, %v1841_v27  ;;  %v371_v58 = vsub.f32 %v1661_v49, %v1749_v47  ;;  %v1886_v39 = vld [vmem:[#allocation8 + $0x8] sm:$0xff] }
  0x6b   :  { %v416_v56 = vmul.f32 %v408_v18, %v1813_v26  ;;  %v830_v10 = vmul.f32 %v1186_v63, %v1800_v40  ;;  %v414_v6 = vmul.f32 %v406_v4, %v1835_v46  ;;  %vm836_vm9 = vweird.f32 %v1186_v63 }
  0x6c   :  { %vm431_vm6 = vcmp.ge.f32.partialorder %v423_v60, 0.0  ;;  %v439_v1 = vmul.f32 0.01, %v423_v60  ;;  %v812_v61 = vmul.f32 0.03125, %v808_v21  ;;  %vm429_vm10 = vcmp.ge.f32.partialorder %v421_v30, 0.0  ;;  %vm1860_vm12 = vmor %vm835_vm7, %vm836_vm9 }
  0x6d   :  { %v424_v20 = vadd.f32 %v416_v56, %v1823_v55  ;;  %v831_v23 = vmul.f32 %v1186_v63, %v830_v10  ;;  %v422_v38 = vadd.f32 %v414_v6, %v1844_v28  ;;  %v437_v44 = vmul.f32 0.01, %v421_v30 }
  0x6e   :  { %v447_v22 = vsel %vm431_vm6, %v423_v60, %v439_v1  ;;  %v816_v41 = vsub.f32 %v812_v61, %v814_v2  ;;  %v404_v9 = vmul.f32 %v1815_v32, %v374_v52  ;;  %v821_v18 = vsub.f32 %v1733_v11, %v1788_v54 }
  0x6f   :  { %474 = vmatpush.msra.mxu0 %v447_v22  ;;  %vm432_vm8 = vcmp.ge.f32.partialorder %v424_v20, 0.0  ;;  %v440_v29 = vmul.f32 0.01, %v424_v20  ;;  %v832_v7 = vmul.f32 0.5, %v831_v23  ;;  %vm430_vm11 = vcmp.ge.f32.partialorder %v422_v38, 0.0  ;;  %v213_v22 = vld [vmem:[#allocation10] sm:$0xff] }
  0x70   :  { %v818_v24 = vmax.f32 %v816_v41, 0.0  ;;  %v438_v13 = vmul.f32 0.01, %v422_v38  ;;  %v445_v57 = vsel %vm429_vm10, %v421_v30, %v437_v44  ;;  %v411_v60 = vmul.f32 %v403_v25, %v207_v16 }
  0x71   :  { %v448_v37 = vsel %vm432_vm8, %v424_v20, %v440_v29  ;;  %v833_v43 = vsub.f32 1.5, %v832_v7  ;;  %475 = vmatpush.msra.mxu0 %v445_v57  ;;  %v412_v56 = vmul.f32 %v404_v9, %v1855_v34  ;;  %v401_v11 = vmul.f32 %v1804_v17, %v371_v58  ;;  %v193_v57 = vld [vmem:[#allocation11] sm:$0xff] }
  0x72   :  { %503 = vmatpush.msra.mxu1 %v448_v37  ;;  %v1870_v53 = vadd.f32 1e-05, %v818_v24  ;;  %v446_v40 = vsel %vm430_vm11, %v422_v38, %v438_v13  ;;  %v372_v49 = vsub.f32 %v1693_v5, %v1758_v14  ;;  %v819_v47 = vsub.f32 %v1730_v8, %v1788_v54 }
  0x73   :  { %v834_v45 = vmul.f32 %v1186_v63, %v833_v43  ;;  %v419_v20 = vadd.f32 %v411_v60, %v215_v59  ;;  %v420_v21 = vadd.f32 %v412_v56, %v1872_v62  ;;  %v409_v23 = vmul.f32 %v401_v11, %v205_v3 }
  0x74   :  { %504 = vmatpush.msra.mxu1 %v446_v40  ;;  %1187 = vrsqrt.f32 %v1870_v53  ;;  %v402_v5 = vmul.f32 %v1815_v32, %v372_v49  ;;  %vm845_vm1 = vweird.f32 %v1870_v53  ;;  %vm449_vm7 = vcmask 261120  }
  0x75   :  { %v838_v4 = vsel %vm1860_vm12, %v1186_v63, %v834_v45  ;;  %vm427_vm13 = vcmp.ge.f32.partialorder %v419_v20, 0.0  ;;  %v435_v8 = vmul.f32 0.01, %v419_v20  ;;  %vm428_vm14 = vcmp.ge.f32.partialorder %v420_v21, 0.0 }
  0x76   :  { %v855_v1 = vmul.f32 %v838_v4, %v825_v51  ;;  %v853_v10 = vmul.f32 %v838_v4, %v823_v42  ;;  %v851_v2 = vmul.f32 %v838_v4, %v821_v18  ;;  %v849_v14 = vmul.f32 %v838_v4, %v819_v47 }
  0x77   :  { %v436_v54 = vmul.f32 0.01, %v420_v21  ;;  %v417_v61 = vadd.f32 %v409_v23, %v213_v22  ;;  %v443_v7 = vsel %vm427_vm13, %v419_v20, %v435_v8  ;;  %v826_v58 = vsub.f32 %v1780_v48, %v1826_v0 }
  0x78   :  { %v863_v63 = vmul.f32 %v855_v1, %v1802_v19  ;;  %v861_v17 = vmul.f32 %v853_v10, %v1833_v15  ;;  %v859_v29 = vmul.f32 %v851_v2, %v207_v16  ;;  %v1891_v19 = vld [vmem:[#allocation10 + $0x8] sm:$0xff]  ;;  %v410_v15 = vmul.f32 %v402_v5, %v1886_v39  ;;  %476 = vmatpush.msra.mxu0 %v443_v7 }
  0x79   :  { %v444_v30 = vsel %vm428_vm14, %v420_v21, %v436_v54  ;;  %v857_v38 = vmul.f32 %v849_v14, %v205_v3  ;;  %vm425_vm2 = vcmp.ge.f32.partialorder %v417_v61, 0.0  ;;  %v433_v16 = vmul.f32 0.01, %v417_v61 }
  0x7a   :  { %v871_v51 = vadd.f32 %v863_v63, %v1810_v35  ;;  %v869_v6 = vadd.f32 %v861_v17, %v1841_v27  ;;  %v1188_v12 = vpop.eup %1187  ;;  %505 = vmatpush.msra.mxu1 %v444_v30  ;;  %v867_v27 = vadd.f32 %v859_v29, %v215_v59  ;;  %v418_v52 = vadd.f32 %v410_v15, %v1891_v19  ;;  %v196_v17 = vld [vmem:[#allocation11 + $0x18] sm:$0xff]  ;;  %v225_v30 = vld [vmem:[#allocation13 + $0x20] sm:$0xff]  ;;  %v1936_v15 = vld [vmem:[#allocation13 + $0x28] sm:$0xff] }
  0x7b   :  { %v840_v35 = vmul.f32 %v1188_v12, %v1870_v53  ;;  %v865_v50 = vadd.f32 %v857_v38, %v213_v22  ;;  %vm846_vm4 = vweird.f32 %v1188_v12  ;;  %v441_v24 = vsel %vm425_vm2, %v417_v61, %v433_v16  ;;  %v1932_v29 = vld [vmem:[#allocation13 + $0x18] sm:$0xff]  ;;  %v1934_v61 = vld [vmem:[#allocation13 + $0x8] sm:$0xff] }
  0x7c   :  { %vm879_vm15 = vcmp.ge.f32.partialorder %v871_v51, 0.0  ;;  %v887_v32 = vmul.f32 0.01, %v871_v51  ;;  %vm877_vm0 = vcmp.ge.f32.partialorder %v869_v6, 0.0  ;;  %v885_v37 = vmul.f32 0.01, %v869_v6  ;;  %477 = vmatpush.msra.mxu0 %v441_v24  ;;  %vm847_vm8 = vmor %vm845_vm1, %vm846_vm4 }
  0x7d   :  { %v841_v43 = vmul.f32 %v1188_v12, %v840_v35  ;;  %vm875_vm3 = vcmp.ge.f32.partialorder %v867_v27, 0.0  ;;  %v883_v44 = vmul.f32 0.01, %v867_v27  ;;  %vm426_vm5 = vcmp.ge.f32.partialorder %v418_v52, 0.0  ;;  %1150 = vmatmul.msk.f32.vlgmr.msra.gmra.mxu0 %vm449_vm7, %v193_v57 }
  0x7e   :  { %v895_v41 = vsel %vm879_vm15, %v871_v51, %v887_v32  ;;  %v893_v42 = vsel %vm877_vm0, %v869_v6, %v885_v37  ;;  %v434_v13 = vmul.f32 0.01, %v418_v52  ;;  %vm873_vm6 = vcmp.ge.f32.partialorder %v865_v50, 0.0  ;;  %v221_v51 = vld [vmem:[#allocation13] sm:$0xff]  ;;  %v223_v6 = vld [vmem:[#allocation13 + $0x10] sm:$0xff] }
  0x7f   :  { %909 = vmatpush.msra.mxu2 %v895_v41  ;;  %v842_v25 = vmul.f32 0.5, %v841_v43  ;;  %v891_v9 = vsel %vm875_vm3, %v867_v27, %v883_v44  ;;  %v881_v45 = vmul.f32 0.01, %v865_v50  ;;  %v824_v60 = vsub.f32 %v1777_v33, %v1826_v0  ;;  %v194_v33 = vld [vmem:[#allocation11 + $0x8] sm:$0xff]  ;;  %v227_v43 = vld [vmem:[#allocation13 + $0x30] sm:$0xff] }
  0x80   :  { %v442_v18 = vsel %vm426_vm5, %v418_v52, %v434_v13  ;;  %v822_v56 = vsub.f32 %v1774_v31, %v1826_v0  ;;  %v820_v3 = vsub.f32 %v1771_v36, %v1826_v0 }
  0x81   :  { %910 = vmatpush.msra.mxu2 %v893_v42  ;;  %v843_v40 = vsub.f32 1.5, %v842_v25  ;;  %506 = vmatpush.msra.mxu1 %v442_v18  ;;  %v889_v59 = vsel %vm873_vm6, %v865_v50, %v881_v45  ;;  %v1967_v25 = vld [vmem:[#allocation13 + $0x38] sm:$0xff] }
  0x82   :  { %1154 = vmatmul.msk.f32.vlgmr.msra.gmra.mxu1 %vm449_vm7, %v193_v57 }
  0x83   :  { %911 = vmatpush.msra.mxu2 %v891_v9  ;;  %v844_v48 = vmul.f32 %v1188_v12, %v843_v40 }
  0x85   :  { %912 = vmatpush.msra.mxu2 %v889_v59  ;;  %v848_v4 = vsel %vm847_vm8, %v1188_v12, %v844_v48  ;;  %1151 = vmatmul.msk.f32.gmra.mxu0 %vm449_vm7, %v194_v33 }
  0x86   :  { %1158 = vmatmul.msk.f32.vlgmr.msra.gmra.mxu2 %vm449_vm7, %v193_v57  ;;  %v856_v53 = vmul.f32 %v848_v4, %v826_v58  ;;  %v854_v11 = vmul.f32 %v848_v4, %v824_v60  ;;  %v852_v49 = vmul.f32 %v848_v4, %v822_v56  ;;  %v850_v47 = vmul.f32 %v848_v4, %v820_v3 }
  0x88   :  { %v864_v1 = vmul.f32 %v856_v53, %v1813_v26  ;;  %v862_v31 = vmul.f32 %v854_v11, %v1835_v46  ;;  %v860_v36 = vmul.f32 %v852_v49, %v1855_v34  ;;  %v858_v0 = vmul.f32 %v850_v47, %v1886_v39 }
  0x8a   :  { %v872_v10 = vadd.f32 %v864_v1, %v1823_v55  ;;  %v870_v20 = vadd.f32 %v862_v31, %v1844_v28  ;;  %v868_v21 = vadd.f32 %v860_v36, %v1872_v62  ;;  %v866_v2 = vadd.f32 %v858_v0, %v1891_v19  ;;  %1155 = vmatmul.msk.f32.gmra.mxu1 %vm449_vm7, %v194_v33  ;;  %v195_v28 = vld [vmem:[#allocation11 + $0x10] sm:$0xff] }
  0x8c   :  { %vm880_vm9 = vcmp.ge.f32.partialorder %v872_v10, 0.0  ;;  %v888_v26 = vmul.f32 0.01, %v872_v10  ;;  %vm878_vm10 = vcmp.ge.f32.partialorder %v870_v20, 0.0  ;;  %v886_v46 = vmul.f32 0.01, %v870_v20 }
  0x8d   :  { %vm876_vm11 = vcmp.ge.f32.partialorder %v868_v21, 0.0  ;;  %v884_v34 = vmul.f32 0.01, %v868_v21  ;;  %v882_v23 = vmul.f32 0.01, %v866_v2  ;;  %vm874_vm12 = vcmp.ge.f32.partialorder %v866_v2, 0.0  ;;  %1152 = vmatmul.msk.f32.gmra.mxu0 %vm449_vm7, %v195_v28 }
  0x8e   :  { %1159 = vmatmul.msk.f32.gmra.mxu2 %vm449_vm7, %v194_v33  ;;  %v896_v22 = vsel %vm880_vm9, %v872_v10, %v888_v26  ;;  %v894_v55 = vsel %vm878_vm10, %v870_v20, %v886_v46 }
  0x8f   :  { %938 = vmatpush.msra.mxu3 %v896_v22  ;;  %v892_v62 = vsel %vm876_vm11, %v868_v21, %v884_v34  ;;  %v890_v63 = vsel %vm874_vm12, %v866_v2, %v882_v23 }
  0x91   :  { %939 = vmatpush.msra.mxu3 %v894_v55 }
  0x92   :  { %1156 = vmatmul.msk.f32.gmra.mxu1 %vm449_vm7, %v195_v28 }
  0x93   :  { %940 = vmatpush.msra.mxu3 %v892_v62 }
  0x95   :  { %941 = vmatpush.msra.mxu3 %v890_v63  ;;  %1153 = vmatmul.msk.f32.gmra.mxu0 %vm449_vm7, %v196_v17 }
  0x96   :  { %1160 = vmatmul.msk.f32.gmra.mxu2 %vm449_vm7, %v195_v28  ;;  %1162 = vmatmul.msk.f32.vlgmr.msra.gmra.mxu3 %vm449_vm7, %v193_v57 }
  0x9a   :  { %1157 = vmatmul.msk.f32.gmra.mxu1 %vm449_vm7, %v196_v17 }
  0x9e   :  { %1161 = vmatmul.msk.f32.gmra.mxu2 %vm449_vm7, %v196_v17  ;;  %1163 = vmatmul.msk.f32.gmra.mxu3 %vm449_vm7, %v194_v33 }
  0xa6   :  { %1164 = vmatmul.msk.f32.gmra.mxu3 %vm449_vm7, %v195_v28 }
  0xae   :  { %1165 = vmatmul.msk.f32.gmra.mxu3 %vm449_vm7, %v196_v17 }
  0xfa   :  { %v479_v39 = vpop.f32.mrf.mxu0 }
  0xfb   :  { %v1938_v38 = vadd.f32 %v479_v39, %v221_v51 }
  0xfd   :  { %v538_v42 = vmul.f32 %v1938_v38, %v1938_v38 }
  0xff   :  { %v508_v5 = vpop.f32.mrf.mxu1 }
 0x100   :  { %v1946_v35 = vadd.f32 %v508_v5, %v1934_v61 }
 0x102   :  { %v482_v8 = vpop.f32.mrf.mxu0  ;;  %v539_v44 = vmul.f32 %v1946_v35, %v1946_v35 }
 0x103   :  { %v1940_v12 = vadd.f32 %v482_v8, %v223_v6 }
 0x105   :  { %v540_v16 = vmul.f32 %v1940_v12, %v1940_v12  ;;  %v520_v50 = vadd.f32 %v1940_v12, %v1938_v38 }
 0x107   :  { %v511_v54 = vpop.f32.mrf.mxu1  ;;  %v546_v18 = vadd.f32 %v540_v16, %v538_v42 }
 0x108   :  { %v1943_v32 = vadd.f32 %v511_v54, %v1932_v29 }
 0x109   :  { %v914_v14 = vpop.f32.mrf.mxu2 }
 0x10a   :  { %v485_v19 = vpop.f32.mrf.mxu0  ;;  %v541_v52 = vmul.f32 %v1943_v32, %v1943_v32  ;;  %v529_v9 = vadd.f32 %v1943_v32, %v1946_v35  ;;  %v1982_v53 = vadd.f32 %v914_v14, %v221_v51 }
 0x10b   :  { %v1948_v27 = vadd.f32 %v485_v19, %v225_v30 }
 0x10c   :  { %v555_v58 = vadd.f32 %v541_v52, %v539_v44  ;;  %v973_v26 = vmul.f32 %v1982_v53, %v1982_v53 }
 0x10d   :  { %v542_v24 = vmul.f32 %v1948_v27, %v1948_v27  ;;  %v521_v40 = vadd.f32 %v520_v50, %v1948_v27 }
 0x10f   :  { %v514_v37 = vpop.f32.mrf.mxu1  ;;  %v547_v11 = vadd.f32 %v546_v18, %v542_v24 }
 0x110   :  { %v1951_v41 = vadd.f32 %v514_v37, %v1936_v15 }
 0x111   :  { %v917_v7 = vpop.f32.mrf.mxu2 }
 0x112   :  { %v543_v13 = vmul.f32 %v1951_v41, %v1951_v41  ;;  %v488_v57 = vpop.f32.mrf.mxu0  ;;  %v1976_v3 = vadd.f32 %v917_v7, %v223_v6  ;;  %v530_v48 = vadd.f32 %v529_v9, %v1951_v41 }
 0x113   :  { %v1972_v59 = vadd.f32 %v488_v57, %v227_v43 }
 0x114   :  { %v556_v49 = vadd.f32 %v555_v58, %v543_v13  ;;  %v975_v10 = vmul.f32 %v1976_v3, %v1976_v3  ;;  %v955_v46 = vadd.f32 %v1976_v3, %v1982_v53 }
 0x115   :  { %v522_v47 = vadd.f32 %v521_v40, %v1972_v59  ;;  %v544_v1 = vmul.f32 %v1972_v59, %v1972_v59 }
 0x116   :  { %v981_v5 = vadd.f32 %v975_v10, %v973_v26 }
 0x117   :  { %v517_v60 = vpop.f32.mrf.mxu1  ;;  %v523_v0 = vrot.slane %v522_v47, 4  ;;  %v548_v20 = vadd.f32 %v547_v11, %v544_v1 }
 0x118   :  { %v1980_v4 = vadd.f32 %v517_v60, %v1967_v25 }
 0x119   :  { %v920_v45 = vpop.f32.mrf.mxu2  ;;  %v1974_v56 = vpop.f32.mrf.mxu3  ;;  %v524_v34 = vadd.f32 %v523_v0, %v522_v47  ;;  %v549_v55 = vrot.slane %v548_v20, 4 }
 0x11a   :  { %v1985_v33 = vadd.f32 %v920_v45, %v225_v30  ;;  %v531_v31 = vadd.f32 %v530_v48, %v1980_v4  ;;  %v545_v36 = vmul.f32 %v1980_v4, %v1980_v4 }
 0x11b   :  { %v525_v17 = vrot.slane %v524_v34, 2  ;;  %v550_v8 = vadd.f32 %v549_v55, %v548_v20 }
 0x11c   :  { %v532_v21 = vrot.slane %v531_v31, 4  ;;  %v557_v2 = vadd.f32 %v556_v49, %v545_v36  ;;  %v977_v22 = vmul.f32 %v1985_v33, %v1985_v33  ;;  %v956_v63 = vadd.f32 %v955_v46, %v1985_v33 }
 0x11d   :  { %v526_v6 = vadd.f32 %v525_v17, %v524_v34  ;;  %v551_v37 = vrot.slane %v550_v8, 2 }
 0x11e   :  { %v533_v23 = vadd.f32 %v532_v21, %v531_v31  ;;  %v558_v28 = vrot.slane %v557_v2, 4  ;;  %v982_v19 = vadd.f32 %v981_v5, %v977_v22 }
 0x11f   :  { %v527_v52 = vrot.slane %v526_v6, 1  ;;  %v552_v50 = vadd.f32 %v551_v37, %v550_v8 }
 0x120   :  { %v534_v54 = vrot.slane %v533_v23, 2  ;;  %v559_v51 = vadd.f32 %v558_v28, %v557_v2  ;;  %v2019_v2 = vadd.f32 %v1974_v56, %v1934_v61 }
 0x121   :  { %v923_v62 = vpop.f32.mrf.mxu2  ;;  %v946_v14 = vpop.f32.mrf.mxu3  ;;  %v528_v9 = vadd.f32 %v527_v52, %v526_v6  ;;  %v553_v57 = vrot.slane %v552_v50, 1 }
 0x122   :  { %v2001_v39 = vadd.f32 %v923_v62, %v227_v43  ;;  %v535_v42 = vadd.f32 %v534_v54, %v533_v23  ;;  %v560_v16 = vrot.slane %v559_v51, 2  ;;  %v2013_v0 = vadd.f32 %v946_v14, %v1932_v29 }
 0x123   :  { %v2006_v60 = vmul.f32 0.03125, %v528_v9  ;;  %v554_v11 = vadd.f32 %v553_v57, %v552_v50  ;;  %v974_v17 = vmul.f32 %v2019_v2, %v2019_v2 }
 0x124   :  { %v957_v7 = vadd.f32 %v956_v63, %v2001_v39  ;;  %v979_v30 = vmul.f32 %v2001_v39, %v2001_v39  ;;  %v536_v43 = vrot.slane %v535_v42, 1  ;;  %v561_v24 = vadd.f32 %v560_v16, %v559_v51 }
 0x125   :  { %v568_v1 = vmul.f32 %v2006_v60, %v2006_v60  ;;  %v566_v10 = vmul.f32 0.03125, %v554_v11  ;;  %v976_v29 = vmul.f32 %v2013_v0, %v2013_v0  ;;  %v964_v61 = vadd.f32 %v2013_v0, %v2019_v2 }
 0x126   :  { %v958_v44 = vrot.slane %v957_v7, 4  ;;  %v983_v13 = vadd.f32 %v982_v19, %v979_v30  ;;  %v537_v18 = vadd.f32 %v536_v43, %v535_v42  ;;  %v562_v58 = vrot.slane %v561_v24, 1 }
 0x127   :  { %v570_v46 = vsub.f32 %v566_v10, %v568_v1  ;;  %v990_v6 = vadd.f32 %v976_v29, %v974_v17  ;;  %v578_v29 = vsub.f32 %v1948_v27, %v2006_v60  ;;  %v2056_v17 = vld [vmem:[#allocation14] sm:$0xff] }
 0x128   :  { %v959_v45 = vadd.f32 %v958_v44, %v957_v7  ;;  %v984_v40 = vrot.slane %v983_v13, 4  ;;  %v563_v49 = vadd.f32 %v562_v58, %v561_v24  ;;  %v2008_v47 = vmul.f32 0.03125, %v537_v18 }
 0x129   :  { %v949_v48 = vpop.f32.mrf.mxu3  ;;  %v572_v23 = vmax.f32 %v570_v46, 0.0 }
 0x12a   :  { %v960_v31 = vrot.slane %v959_v45, 2  ;;  %v985_v36 = vadd.f32 %v984_v40, %v983_v13  ;;  %v567_v20 = vmul.f32 0.03125, %v563_v49  ;;  %v569_v21 = vmul.f32 %v2008_v47, %v2008_v47 }
 0x12b   :  { %v2022_v26 = vadd.f32 %v949_v48, %v1936_v15  ;;  %v582_v56 = vadd.f32 1e-05, %v572_v23 }
 0x12c   :  { %v571_v34 = vsub.f32 %v567_v20, %v569_v21  ;;  %v961_v22 = vadd.f32 %v960_v31, %v959_v45  ;;  %v986_v55 = vrot.slane %v985_v36, 2 }
 0x12d   :  { %v978_v15 = vmul.f32 %v2022_v26, %v2022_v26  ;;  %v965_v7 = vadd.f32 %v964_v61, %v2022_v26  ;;  %1189 = vrsqrt.f32 %v582_v56  ;;  %vm590_vm14 = vweird.f32 %v582_v56 }
 0x12e   :  { %v573_v28 = vmax.f32 %v571_v34, 0.0  ;;  %v962_v62 = vrot.slane %v961_v22, 1  ;;  %v987_v63 = vadd.f32 %v986_v55, %v985_v36  ;;  %v574_v34 = vsub.f32 %v1938_v38, %v2006_v60 }
 0x12f   :  { %v991_v37 = vadd.f32 %v990_v6, %v978_v15  ;;  %v576_v55 = vsub.f32 %v1940_v12, %v2006_v60  ;;  %v580_v61 = vsub.f32 %v1972_v59, %v2006_v60  ;;  %v575_v38 = vsub.f32 %v1946_v35, %v2008_v47  ;;  %v2077_v35 = vld [vmem:[#allocation16] sm:$0xff] }
 0x130   :  { %v2032_v14 = vadd.f32 1e-05, %v573_v28  ;;  %v963_v8 = vadd.f32 %v962_v62, %v961_v22  ;;  %v988_v54 = vrot.slane %v987_v63, 1  ;;  %v577_v12 = vsub.f32 %v1943_v32, %v2008_v47  ;;  %v2079_v32 = vld [vmem:[#allocation16 + $0x10] sm:$0xff] }
 0x131   :  { %v952_v5 = vpop.f32.mrf.mxu3  ;;  %v579_v59 = vsub.f32 %v1951_v41, %v2008_v47  ;;  %v581_v60 = vsub.f32 %v1980_v4, %v2008_v47  ;;  %v2086_v41 = vld [vmem:[#allocation14 + $0x8] sm:$0xff] }
 0x132   :  { %v2035_v51 = vadd.f32 %v952_v5, %v1967_v25  ;;  %1191 = vrsqrt.f32 %v2032_v14  ;;  %v989_v30 = vadd.f32 %v988_v54, %v987_v63  ;;  %v2039_v19 = vmul.f32 0.03125, %v963_v8  ;;  %v2068_v5 = vld [vmem:[#allocation14 + $0x20] sm:$0xff]  ;;  %v2070_v8 = vld [vmem:[#allocation14 + $0x30] sm:$0xff] }
 0x133   :  { %v1190_v24 = vpop.eup %1189  ;;  %vm600_vm1 = vweird.f32 %v2032_v14 }
 0x134   :  { %v966_v42 = vadd.f32 %v965_v7, %v2035_v51  ;;  %v980_v16 = vmul.f32 %v2035_v51, %v2035_v51  ;;  %v1001_v52 = vmul.f32 0.03125, %v989_v30  ;;  %v1003_v25 = vmul.f32 %v2039_v19, %v2039_v19 }
 0x135   :  { %v585_v57 = vmul.f32 %v1190_v24, %v582_v56  ;;  %vm591_vm13 = vweird.f32 %v1190_v24  ;;  %v2066_v56 = vld [vmem:[#allocation14 + $0x10] sm:$0xff] }
 0x136   :  { %v967_v44 = vrot.slane %v966_v42, 4  ;;  %v992_v50 = vadd.f32 %v991_v37, %v980_v16  ;;  %v1005_v43 = vsub.f32 %v1001_v52, %v1003_v25  ;;  %vm592_vm0 = vmor %vm590_vm14, %vm591_vm13  ;;  %v2084_v16 = vld [vmem:[#allocation16 + $0x30] sm:$0xff] }
 0x137   :  { %v586_v11 = vmul.f32 %v1190_v24, %v585_v57 }
 0x138   :  { %v968_v13 = vadd.f32 %v967_v44, %v966_v42  ;;  %v993_v9 = vrot.slane %v992_v50, 4  ;;  %v1192_v45 = vpop.eup %1191  ;;  %v1007_v18 = vmax.f32 %v1005_v43, 0.0  ;;  %v2082_v42 = vld [vmem:[#allocation16 + $0x20] sm:$0xff] }
 0x139   :  { %v595_v58 = vmul.f32 %v1192_v45, %v2032_v14  ;;  %v587_v10 = vmul.f32 0.5, %v586_v11  ;;  %vm601_vm15 = vweird.f32 %v1192_v45 }
 0x13a   :  { %v969_v40 = vrot.slane %v968_v13, 2  ;;  %v994_v48 = vadd.f32 %v993_v9, %v992_v50  ;;  %v2047_v49 = vadd.f32 1e-05, %v1007_v18  ;;  %vm602_vm2 = vmor %vm600_vm1, %vm601_vm15  ;;  %v2100_v9 = vld [vmem:[#allocation14 + $0x38] sm:$0xff] }
 0x13b   :  { %v596_v1 = vmul.f32 %v1192_v45, %v595_v58  ;;  %v588_v22 = vsub.f32 1.5, %v587_v10  ;;  %v2110_v10 = vld [vmem:[#allocation16 + $0x18] sm:$0xff] }
 0x13c   :  { %v970_v31 = vadd.f32 %v969_v40, %v968_v13  ;;  %v995_v36 = vrot.slane %v994_v48, 2  ;;  %1193 = vrsqrt.f32 %v2047_v49  ;;  %v2098_v13 = vld [vmem:[#allocation14 + $0x28] sm:$0xff]  ;;  %vm1025_vm12 = vweird.f32 %v2047_v49 }
 0x13d   :  { %v597_v20 = vmul.f32 0.5, %v596_v1  ;;  %v589_v28 = vmul.f32 %v1190_v24, %v588_v22 }
 0x13e   :  { %v971_v21 = vrot.slane %v970_v31, 1  ;;  %v996_v46 = vadd.f32 %v995_v36, %v994_v48  ;;  %v2108_v36 = vld [vmem:[#allocation17] sm:$0xff] }
 0x13f   :  { %v598_v23 = vsub.f32 1.5, %v597_v20  ;;  %v593_v54 = vsel %vm592_vm0, %v1190_v24, %v589_v28  ;;  %v2096_v24 = vld [vmem:[#allocation14 + $0x18] sm:$0xff]  ;;  %v2112_v20 = vld [vmem:[#allocation16 + $0x28] sm:$0xff] }
 0x140   :  { %v972_v62 = vadd.f32 %v971_v21, %v970_v31  ;;  %v997_v63 = vrot.slane %v996_v46, 1  ;;  %v604_v6 = vmul.f32 %v593_v54, %v574_v34  ;;  %v606_v7 = vmul.f32 %v593_v54, %v576_v55  ;;  %v2106_v31 = vld [vmem:[#allocation16 + $0x8] sm:$0xff]  ;;  %v2118_v55 = vld [vmem:[#allocation17 + $0x10] sm:$0xff] }
 0x141   :  { %v599_v15 = vmul.f32 %v1192_v45, %v598_v23  ;;  %v608_v30 = vmul.f32 %v593_v54, %v578_v29  ;;  %v610_v37 = vmul.f32 %v593_v54, %v580_v61  ;;  %v2120_v29 = vld [vmem:[#allocation16 + $0x38] sm:$0xff]  ;;  %v2123_v61 = vld [vmem:[#allocation17 + $0x20] sm:$0xff] }
 0x142   :  { %v2064_v27 = vpop.eup %1193  ;;  %v998_v47 = vadd.f32 %v997_v63, %v996_v46  ;;  %v2090_v14 = vmul.f32 0.03125, %v972_v62  ;;  %v612_v25 = vmul.f32 %v604_v6, %v2056_v17  ;;  %v614_v44 = vmul.f32 %v606_v7, %v2066_v56 }
 0x143   :  { %v603_v52 = vsel %vm602_vm2, %v1192_v45, %v599_v15  ;;  %v1020_v4 = vmul.f32 %v2064_v27, %v2047_v49  ;;  %v616_v50 = vmul.f32 %v608_v30, %v2068_v5  ;;  %v618_v43 = vmul.f32 %v610_v37, %v2070_v8 }
 0x144   :  { %v605_v45 = vmul.f32 %v603_v52, %v575_v38  ;;  %v607_v57 = vmul.f32 %v603_v52, %v577_v12  ;;  %v609_v18 = vmul.f32 %v603_v52, %v579_v59  ;;  %v611_v58 = vmul.f32 %v603_v52, %v581_v60  ;;  %v2125_v38 = vld [vmem:[#allocation17 + $0x30] sm:$0xff] }
 0x145   :  { %v620_v40 = vadd.f32 %v612_v25, %v2077_v35  ;;  %v622_v48 = vadd.f32 %v614_v44, %v2079_v32  ;;  %v624_v11 = vadd.f32 %v616_v50, %v2082_v42  ;;  %v626_v1 = vadd.f32 %v618_v43, %v2084_v16  ;;  %v2135_v43 = vld [vmem:[#allocation17 + $0x8] sm:$0xff] }
 0x146   :  { %v613_v21 = vmul.f32 %v605_v45, %v2086_v41  ;;  %v615_v46 = vmul.f32 %v607_v57, %v2096_v24  ;;  %v617_v34 = vmul.f32 %v609_v18, %v2098_v13  ;;  %v619_v22 = vmul.f32 %v611_v58, %v2100_v9  ;;  %v2137_v45 = vld [vmem:[#allocation17 + $0x18] sm:$0xff] }
 0x147   :  { %vm628_vm3 = vcmp.ge.f32.partialorder %v620_v40, 0.0  ;;  %vm630_vm4 = vcmp.ge.f32.partialorder %v622_v48, 0.0  ;;  %vm632_vm5 = vcmp.ge.f32.partialorder %v624_v11, 0.0  ;;  %vm634_vm6 = vcmp.ge.f32.partialorder %v626_v1, 0.0 }
 0x148   :  { %v636_v23 = vmul.f32 0.01, %v620_v40  ;;  %v638_v28 = vmul.f32 0.01, %v622_v48  ;;  %v640_v62 = vmul.f32 0.01, %v624_v11  ;;  %v621_v63 = vadd.f32 %v613_v21, %v2106_v31 }
 0x149   :  { %v642_v12 = vmul.f32 0.01, %v626_v1  ;;  %v623_v15 = vadd.f32 %v615_v46, %v2110_v10  ;;  %v625_v54 = vadd.f32 %v617_v34, %v2112_v20  ;;  %v1002_v59 = vmul.f32 0.03125, %v998_v47  ;;  %v2142_v21 = vld [vmem:[#allocation17 + $0x28] sm:$0xff] }
 0x14a   :  { %v644_v60 = vsel %vm628_vm3, %v620_v40, %v636_v23  ;;  %v646_v6 = vsel %vm630_vm4, %v622_v48, %v638_v28  ;;  %v648_v7 = vsel %vm632_vm5, %v624_v11, %v640_v62  ;;  %v627_v30 = vadd.f32 %v619_v22, %v2120_v29 }
 0x14b   :  { %v650_v37 = vsel %vm634_vm6, %v626_v1, %v642_v12  ;;  %v652_v52 = vmul.f32 %v644_v60, %v2108_v36  ;;  %v654_v25 = vmul.f32 %v646_v6, %v2118_v55  ;;  %vm629_vm7 = vcmp.ge.f32.partialorder %v621_v63, 0.0  ;;  %v2147_v12 = vld [vmem:[#allocation17 + $0x38] sm:$0xff] }
 0x14c   :  { %v656_v44 = vmul.f32 %v648_v7, %v2123_v61  ;;  %v658_v50 = vmul.f32 %v650_v37, %v2125_v38  ;;  %vm631_vm8 = vcmp.ge.f32.partialorder %v623_v15, 0.0  ;;  %vm633_vm9 = vcmp.ge.f32.partialorder %v625_v54, 0.0 }
 0x14d   :  { %v660_v47 = vadd.f32 %v654_v25, %v652_v52  ;;  %v637_v57 = vmul.f32 0.01, %v621_v63  ;;  %v639_v18 = vmul.f32 0.01, %v623_v15  ;;  %v641_v58 = vmul.f32 0.01, %v625_v54 }
 0x14e   :  { %vm635_vm10 = vcmp.ge.f32.partialorder %v627_v30, 0.0  ;;  %v643_v40 = vmul.f32 0.01, %v627_v30  ;;  %v1021_v48 = vmul.f32 %v2064_v27, %v1020_v4  ;;  %v1004_v11 = vmul.f32 %v2090_v14, %v2090_v14 }
 0x14f   :  { %v661_v1 = vadd.f32 %v660_v47, %v656_v44  ;;  %v645_v46 = vsel %vm629_vm7, %v621_v63, %v637_v57  ;;  %v647_v34 = vsel %vm631_vm8, %v623_v15, %v639_v18  ;;  %v649_v22 = vsel %vm633_vm9, %v625_v54, %v641_v58 }
 0x150   :  { %v653_v23 = vmul.f32 %v645_v46, %v2135_v43  ;;  %v655_v28 = vmul.f32 %v647_v34, %v2137_v45  ;;  %v651_v60 = vsel %vm635_vm10, %v627_v30, %v643_v40  ;;  %v1022_v6 = vmul.f32 0.5, %v1021_v48 }
 0x151   :  { %v662_v62 = vadd.f32 %v661_v1, %v658_v50  ;;  %v1006_v4 = vsub.f32 %v1002_v59, %v1004_v11  ;;  %v657_v7 = vmul.f32 %v649_v22, %v2142_v21  ;;  %vm1026_vm11 = vweird.f32 %v2064_v27 }
 0x152   :  { %v669_v37 = vadd.f32 %v655_v28, %v653_v23  ;;  %v1023_v25 = vsub.f32 1.5, %v1022_v6  ;;  %v659_v15 = vmul.f32 %v651_v60, %v2147_v12  ;;  %v1009_v59 = vsub.f32 %v1982_v53, %v2039_v19  ;;  %vm1027_vm13 = vmor %vm1025_vm12, %vm1026_vm11 }
 0x153   :  { %v663_v52 = vrot.slane %v662_v62, 4  ;;  %v1008_v63 = vmax.f32 %v1006_v4, 0.0  ;;  %v1011_v47 = vsub.f32 %v1976_v3, %v2039_v19  ;;  %v1013_v57 = vsub.f32 %v1985_v33, %v2039_v19 }
 0x154   :  { %v670_v54 = vadd.f32 %v669_v37, %v657_v7  ;;  %v1024_v44 = vmul.f32 %v2064_v27, %v1023_v25  ;;  %v1015_v58 = vsub.f32 %v2001_v39, %v2039_v19  ;;  %vm694_vm7 = vcmask 1040384  }
 0x155   :  { %v2154_v50 = vadd.f32 1e-05, %v1008_v63  ;;  %v664_v18 = vadd.f32 %v663_v52, %v662_v62 }
 0x156   :  { %v671_v30 = vadd.f32 %v670_v54, %v659_v15  ;;  %v1028_v40 = vsel %vm1027_vm13, %v2064_v27, %v1024_v44 }
 0x157   :  { %1195 = vrsqrt.f32 %v2154_v50  ;;  %v1039_v48 = vmul.f32 %v1028_v40, %v1009_v59  ;;  %v1041_v11 = vmul.f32 %v1028_v40, %v1011_v47  ;;  %v1043_v1 = vmul.f32 %v1028_v40, %v1013_v57 }
 0x158   :  { %v672_v49 = vrot.slane %v671_v30, 4  ;;  %v1045_v53 = vmul.f32 %v1028_v40, %v1015_v58  ;;  %v665_v23 = vrot.slane %v664_v18, 2  ;;  %vm1035_vm3 = vweird.f32 %v2154_v50 }
 0x159   :  { %v1047_v46 = vmul.f32 %v1039_v48, %v2056_v17  ;;  %v1049_v3 = vmul.f32 %v1041_v11, %v2066_v56  ;;  %v1051_v33 = vmul.f32 %v1043_v1, %v2068_v5  ;;  %v1010_v11 = vsub.f32 %v2019_v2, %v2090_v14 }
 0x15a   :  { %v673_v34 = vadd.f32 %v672_v49, %v671_v30  ;;  %v1053_v22 = vmul.f32 %v1045_v53, %v2070_v8  ;;  %v666_v60 = vadd.f32 %v665_v23, %v664_v18  ;;  %v1014_v1 = vsub.f32 %v2022_v26, %v2090_v14 }
 0x15b   :  { %v1055_v39 = vadd.f32 %v1047_v46, %v2077_v35  ;;  %v1057_v19 = vadd.f32 %v1049_v3, %v2079_v32  ;;  %v1059_v27 = vadd.f32 %v1051_v33, %v2082_v42  ;;  %v2178_v32 = vld [vmem:[%s2238_s10] sm:$0x3]  ;;  %s1489_s10 = smov [#allocation19]  }
 0x15c   :  { %v1061_v62 = vadd.f32 %v1053_v22, %v2084_v16  ;;  %v674_v56 = vrot.slane %v673_v34, 2  ;;  %v667_v42 = vrot.slane %v666_v60, 1  ;;  %v679_v44 = vperm.slane %v2178_v32, 0  ;;  %s1133_s26 = sshll.u32 %s1489_s10, 4  ;;  %s1134_s26 = int_to_ptr.vmem [resolvable:$true] %s1133_s26 }
 0x15d   :  { %v1196_v28 = vpop.eup %1195  ;;  %vm1063_vm14 = vcmp.ge.f32.partialorder %v1055_v39, 0.0  ;;  %vm1065_vm15 = vcmp.ge.f32.partialorder %v1057_v19, 0.0  ;;  %vm1067_vm0 = vcmp.ge.f32.partialorder %v1059_v27, 0.0  ;;  %v1071_v17 = vmul.f32 0.01, %v1055_v39 }
 0x15e   :  { %v1073_v5 = vmul.f32 0.01, %v1057_v19  ;;  %v1075_v6 = vmul.f32 0.01, %v1059_v27  ;;  %v1030_v8 = vmul.f32 %v1196_v28, %v2154_v50  ;;  %vm1069_vm1 = vcmp.ge.f32.partialorder %v1061_v62, 0.0 }
 0x15f   :  { %v1077_v4 = vmul.f32 0.01, %v1061_v62  ;;  %v1079_v35 = vsel %vm1063_vm14, %v1055_v39, %v1071_v17  ;;  %v668_v15 = vadd.f32 %v667_v42, %v666_v60  ;;  %v675_v54 = vadd.f32 %v674_v56, %v673_v34 }
 0x160   :  { %v1081_v16 = vsel %vm1065_vm15, %v1057_v19, %v1073_v5  ;;  %v1083_v7 = vsel %vm1067_vm0, %v1059_v27, %v1075_v6  ;;  %v1087_v37 = vmul.f32 %v1079_v35, %v2108_v36  ;;  %v1031_v52 = vmul.f32 %v1196_v28, %v1030_v8 }
 0x161   :  { %v1089_v25 = vmul.f32 %v1081_v16, %v2118_v55  ;;  %v1085_v30 = vsel %vm1069_vm1, %v1061_v62, %v1077_v4  ;;  %v1091_v59 = vmul.f32 %v1083_v7, %v2123_v61  ;;  %vm1036_vm2 = vweird.f32 %v1196_v28 }
 0x162   :  { %v1032_v63 = vmul.f32 0.5, %v1031_v52  ;;  %v676_v18 = vrot.slane %v675_v54, 1  ;;  %v680_v58 = vperm.slane %v2178_v32, 1  ;;  %v1093_v36 = vmul.f32 %v1085_v30, %v2125_v38  ;;  %vm1037_vm4 = vmor %vm1035_vm3, %vm1036_vm2 }
 0x163   :  { %v1095_v47 = vadd.f32 %v1089_v25, %v1087_v37  ;;  %v683_v48 = vadd.f32 %v679_v44, %v668_v15  ;;  %v1012_v61 = vsub.f32 %v2013_v0, %v2090_v14  ;;  %v1016_v50 = vsub.f32 %v2035_v51, %v2090_v14 }
 0x164   :  { %v1033_v57 = vsub.f32 1.5, %v1032_v63  ;;  %v677_v49 = vadd.f32 %v676_v18, %v675_v54  ;;  %v697_v22 = vlaneseq }
 0x165   :  { %v1096_v40 = vadd.f32 %v1095_v47, %v1091_v59  ;;  %v687_v23 = vmul.f32 0.01, %v683_v48  ;;  %vm685_vm6 = vcmp.ge.f32.partialorder %v683_v48, 0.0 }
 0x166   :  { %v1034_v55 = vmul.f32 %v1196_v28, %v1033_v57  ;;  %v684_v46 = vadd.f32 %v680_v58, %v677_v49  ;;  %vm2207_vm8 = vcmp.lt.s32.totalorder %v697_v22, 256 }
 0x167   :  { %v1097_v53 = vadd.f32 %v1096_v40, %v1093_v36 }
 0x168   :  { %v1038_v38 = vsel %vm1037_vm4, %v1196_v28, %v1034_v55  ;;  %vm686_vm5 = vcmp.ge.f32.partialorder %v684_v46, 0.0  ;;  %v688_v0 = vmul.f32 0.01, %v684_v46 }
 0x169   :  { %v1040_v3 = vmul.f32 %v1038_v38, %v1010_v11  ;;  %v1042_v33 = vmul.f32 %v1038_v38, %v1012_v61  ;;  %v1044_v34 = vmul.f32 %v1038_v38, %v1014_v1  ;;  %v1046_v2 = vmul.f32 %v1038_v38, %v1016_v50 }
 0x16a   :  { %v1098_v51 = vrot.slane %v1097_v53, 4  ;;  %v690_v27 = vsel %vm686_vm5, %v684_v46, %v688_v0 }
 0x16b   :  { %v1048_v39 = vmul.f32 %v1040_v3, %v2086_v41  ;;  %v1050_v26 = vmul.f32 %v1042_v33, %v2096_v24  ;;  %v1052_v19 = vmul.f32 %v1044_v34, %v2098_v13  ;;  %v1054_v14 = vmul.f32 %v1046_v2, %v2100_v9 }
 0x16c   :  { %v693_v17 = vrot.slane %v690_v27, 7  ;;  %v689_v41 = vsel %vm685_vm6, %v683_v48, %v687_v23  ;;  %v1099_v6 = vadd.f32 %v1098_v51, %v1097_v53 }
 0x16d   :  { %v1056_v28 = vadd.f32 %v1048_v39, %v2106_v31  ;;  %v1058_v62 = vadd.f32 %v1050_v26, %v2110_v10  ;;  %v1060_v60 = vadd.f32 %v1052_v19, %v2112_v20  ;;  %v1062_v56 = vadd.f32 %v1054_v14, %v2120_v29 }
 0x16e   :  { %v695_v31 = vsel %vm694_vm7, %v689_v41, %v693_v17  ;;  %v1100_v37 = vrot.slane %v1099_v6, 2 }
 0x16f   :  { %vm1064_vm9 = vcmp.ge.f32.partialorder %v1056_v28, 0.0  ;;  %vm1066_vm10 = vcmp.ge.f32.partialorder %v1058_v62, 0.0  ;;  %vm1068_vm11 = vcmp.ge.f32.partialorder %v1060_v60, 0.0  ;;  %v1072_v13 = vmul.f32 0.01, %v1056_v28 }
 0x170   :  { %v1074_v9 = vmul.f32 0.01, %v1058_v62  ;;  %v1076_v5 = vmul.f32 0.01, %v1060_v60  ;;  %vm1070_vm12 = vcmp.ge.f32.partialorder %v1062_v56, 0.0  ;;  %v1101_v15 = vadd.f32 %v1100_v37, %v1099_v6 }
 0x171   :  { %v1078_v10 = vmul.f32 0.01, %v1062_v56  ;;  %v1080_v20 = vsel %vm1064_vm9, %v1056_v28, %v1072_v13  ;;  %701 = vst.msk [vmem:[#allocation19] sm:$0x3] %vm2207_vm8, %v695_v31 }
 0x172   :  { %v1082_v29 = vsel %vm1066_vm10, %v1058_v62, %v1074_v9  ;;  %v1084_v8 = vsel %vm1068_vm11, %v1060_v60, %v1076_v5  ;;  %v1088_v4 = vmul.f32 %v1080_v20, %v2135_v43  ;;  %v1102_v59 = vrot.slane %v1101_v15, 1 }
 0x173   :  { %v1090_v35 = vmul.f32 %v1082_v29, %v2137_v45  ;;  %v1086_v42 = vsel %vm1070_vm12, %v1062_v56, %v1078_v10  ;;  %v1092_v16 = vmul.f32 %v1084_v8, %v2142_v21 }
 0x174   :  { %v1094_v52 = vmul.f32 %v1086_v42, %v2147_v12  ;;  %v1103_v57 = vadd.f32 %v1102_v59, %v1101_v15 }
 0x175   :  { %v1104_v7 = vadd.f32 %v1090_v35, %v1088_v4 }
 0x176   :  { %v1113_v45 = vadd.f32 %v1103_v57, %v679_v44 }
 0x177   :  { %v1105_v25 = vadd.f32 %v1104_v7, %v1092_v16 }
 0x178   :  { %v1117_v36 = vmul.f32 0.01, %v1113_v45  ;;  %vm1115_vm14 = vcmp.ge.f32.partialorder %v1113_v45, 0.0 }
 0x179   :  { %v1106_v63 = vadd.f32 %v1105_v25, %v1094_v52 }
 0x17a   :  { %v1119_v48 = vsel %vm1115_vm14, %v1113_v45, %v1117_v36 }
 0x17b   :  { %v1107_v54 = vrot.slane %v1106_v63, 4 }
 0x17d   :  { %v1108_v30 = vadd.f32 %v1107_v54, %v1106_v63 }
 0x17f   :  { %v1109_v47 = vrot.slane %v1108_v30, 2 }
 0x181   :  { %v1110_v18 = vadd.f32 %v1109_v47, %v1108_v30 }
 0x183   :  { %v1111_v40 = vrot.slane %v1110_v18, 1 }
 0x185   :  { %v1112_v43 = vadd.f32 %v1111_v40, %v1110_v18 }
 0x187   :  { %v1114_v21 = vadd.f32 %v1112_v43, %v680_v58 }
 0x189   :  { %vm1116_vm13 = vcmp.ge.f32.partialorder %v1114_v21, 0.0  ;;  %v1118_v12 = vmul.f32 0.01, %v1114_v21 }
 0x18b   :  { %v1120_v55 = vsel %vm1116_vm13, %v1114_v21, %v1118_v12 }
 0x18c   :  { %v1123_v49 = vrot.slane %v1120_v55, 7 }
 0x18e   :  { %v1124_v44 = vsel %vm694_vm7, %v1119_v48, %v1123_v49 }
 0x18f   :  { %1127 = vst.msk [vmem:[#allocation19 + $0x2] sm:$0x3] %vm2207_vm8, %v1124_v44 }
 0x190   :  { %1138 = dma.vmem_to_hbm [thread:$0]  %s1134_s26, 64, %s1136_s24, [#allocation4]  }
 0x191   :  { %1473 = dma.done.wait [#allocation4], 64  }
 0x192   :  { %1474 = vsyncadd [#allocation4], 4294967232 }
 0x193   :  { %1143 = vsyncpa [#allocation3], 1 }
 0x194   :  { %1144 = vsyncpa [#allocation6], 1 }
 0x195   :  { %1145 = vsyncpa [#allocation9], 1 }
 0x196   :  { %1146 = vsyncpa [#allocation12], 1 }
 0x197   :  { %1147 = vsyncpa [#allocation15], 1 }
 0x198   :  { %1148 = vsyncpa [#allocation18], 1 }
 0x199   :  { %1149 = vsyncpa [#allocation4], 1 }

</bundles_post_ra>
